<compile_context>
chip_gen: v7x
topology: tpu7x:2x2x1
jax: 0.10.0
libtpu: 0.0.40
codegen_flags: <defaults>
</compile_context>

<pallas_src>
import functools

import jax
import jax.numpy as jnp
from jax import lax
from jax.experimental import pallas as pl
from jax.experimental.pallas import tpu as pltpu

NORM_EPS = 1e-12  # F.normalize default eps


# ----------------------------------------------------------------------------
# Pallas kernels
# ----------------------------------------------------------------------------
def _l2norm_rows_kernel(m_ref, mn_ref):
    """Row-wise L2 normalization (F.normalize(dim=1)) of the memory matrix."""
    m = m_ref[...]
    sq = jnp.sum(m * m, axis=1, keepdims=True)
    # x / max(||x||, eps) == x * rsqrt(max(||x||^2, eps^2))
    mn_ref[...] = m * lax.rsqrt(jnp.maximum(sq, NORM_EPS * NORM_EPS))


def _memory_lookup_kernel(x_ref, g_ref, mnt_ref, m_ref, score_ref, out_ref,
                          *, inv_tau):
    """Fused: normalize(x) -> cosine score -> hard gumbel one-hot -> onehot @ m."""
    x = x_ref[...]                                            # (tm, c) f32
    sq = jnp.sum(x * x, axis=1, keepdims=True)
    xn = x * lax.rsqrt(jnp.maximum(sq, NORM_EPS * NORM_EPS))

    # Cosine-similarity scores on the MXU (f32 accumulate), memory kept resident.
    score = jnp.dot(xn, mnt_ref[...], preferred_element_type=jnp.float32)  # (tm, k)
    score_ref[...] = score

    # Hard gumbel-softmax forward value: one_hot(argmax((score + g) / tau)).
    pert = (score + g_ref[...]) * inv_tau
    rowmax = jnp.max(pert, axis=1, keepdims=True)
    lane = lax.broadcasted_iota(jnp.int32, pert.shape, 1).astype(jnp.float32)
    big = jnp.float32(pert.shape[1])
    # first index attaining the max (matches torch.argmax tie-breaking)
    idx = jnp.min(jnp.where(pert == rowmax, lane, big), axis=1, keepdims=True)
    onehot = (lane == idx).astype(jnp.float32)

    # Memory lookup as onehot @ m on the MXU (no gather).
    out_ref[...] = jnp.dot(onehot, m_ref[...],
                           preferred_element_type=jnp.float32)


# ----------------------------------------------------------------------------
# Wrappers
# ----------------------------------------------------------------------------
def l2_normalize_rows(m, row_tile=128):
    k, c = m.shape
    t = row_tile if (k % row_tile == 0) else k
    return pl.pallas_call(
        _l2norm_rows_kernel,
        out_shape=jax.ShapeDtypeStruct((k, c), jnp.float32),
        grid=(k // t,),
        in_specs=[pl.BlockSpec((t, c), lambda i: (i, 0))],
        out_specs=pl.BlockSpec((t, c), lambda i: (i, 0)),
        compiler_params=pltpu.CompilerParams(
            dimension_semantics=("parallel",)),
    )(m)


def _row_tile(n):
    for t in (512, 256, 128):
        if n % t == 0 and n // t >= 2:
            return t
    return n  # fall back to a single full block for tiny / odd n


def memory_lookup(x2d, gumbel, mn_t, m, tau):
    n, c = x2d.shape
    k = m.shape[0]
    tm = _row_tile(n)
    kernel = functools.partial(_memory_lookup_kernel, inv_tau=float(1.0 / tau))

    flops = 4 * n * k * c                       # score matmul + lookup matmul
    bytes_accessed = 4 * (n * c + n * k + 2 * k * c + n * k + n * c)

    score, out = pl.pallas_call(
        kernel,
        out_shape=(jax.ShapeDtypeStruct((n, k), jnp.float32),
                   jax.ShapeDtypeStruct((n, c), jnp.float32)),
        grid=(n // tm,),
        in_specs=[
            pl.BlockSpec((tm, c), lambda i: (i, 0)),   # x rows (tiled, pipelined)
            pl.BlockSpec((tm, k), lambda i: (i, 0)),   # gumbel noise rows
            pl.BlockSpec((c, k), lambda i: (0, 0)),    # normalized memory^T (resident)
            pl.BlockSpec((k, c), lambda i: (0, 0)),    # raw memory (resident)
        ],
        out_specs=(
            pl.BlockSpec((tm, k), lambda i: (i, 0)),   # score (lane-dense: k % 128 == 0)
            pl.BlockSpec((tm, c), lambda i: (i, 0)),   # out   (lane-dense: c % 128 == 0)
        ),
        compiler_params=pltpu.CompilerParams(
            dimension_semantics=("parallel",)),
        cost_estimate=pl.CostEstimate(
            flops=int(flops), transcendentals=int(n),
            bytes_accessed=int(bytes_accessed)),
    )(x2d, gumbel, mn_t, m)
    return score, out


def memory_block_forward(x_nchw, memory, gumbel, min_T=0.03):
    """Eval-mode forward of _Memory_Block.  Returns (out [b,c,h,w], score [n,k])."""
    # TODO(synk): training-mode EMA update of self.units and cur_T decay are
    # stateful buffer mutations (not part of the eval forward) and are omitted.
    b, c, h, w = x_nchw.shape
    x2d = jnp.transpose(x_nchw, (0, 2, 3, 1)).reshape(-1, c)   # (n, c)
    mn = l2_normalize_rows(memory)                             # (k, c)
    mn_t = mn.T   # tiny parameter-side transpose so the kernel matmul is (tm,c)x(c,k)
    score, out2d = memory_lookup(x2d, gumbel, mn_t, memory, min_T)
    out = jnp.transpose(out2d.reshape(b, h, w, c), (0, 3, 1, 2))
    return out, score


# ----------------------------------------------------------------------------
# Pure-JAX reference (sanity check only)
# ----------------------------------------------------------------------------
def reference_forward(x_nchw, memory, gumbel, min_T=0.03):
    b, c, h, w = x_nchw.shape
    x = jnp.transpose(x_nchw, (0, 2, 3, 1)).reshape(-1, c)
    xn = x / jnp.maximum(jnp.linalg.norm(x, axis=1, keepdims=True), NORM_EPS)
    mn = memory / jnp.maximum(
        jnp.linalg.norm(memory, axis=1, keepdims=True), NORM_EPS)
    score = jnp.dot(xn, mn.T, precision=lax.Precision.HIGHEST)
    pert = (score + gumbel) / min_T
    idx = jnp.argmax(pert, axis=1)
    onehot = jax.nn.one_hot(idx, memory.shape[0], dtype=jnp.float32)
    out = jnp.dot(onehot, memory, precision=lax.Precision.HIGHEST)
    out = jnp.transpose(out.reshape(b, h, w, c), (0, 3, 1, 2))
    return out, score


# ----------------------------------------------------------------------------
if __name__ == "__main__":
    key = jax.random.PRNGKey(0)
    kx, km, kg = jax.random.split(key, 3)

    # small but lane-dense shapes implied by the module: x (b, hdim, h, w)
    b, hdim, kdim, h, w = 2, 128, 256, 16, 16
    min_T = 0.03  # eval mode -> tau = min_T

    x = jax.random.normal(kx, (b, hdim, h, w), jnp.float32)
    memory = jax.random.normal(km, (kdim, hdim), jnp.float32)     # units.weight
    # Gumbel noise generated host-side (deterministic) and shared with the reference.
    gumbel = jax.random.gumbel(kg, (b * h * w, kdim), jnp.float32)

    fwd = jax.jit(functools.partial(memory_block_forward, min_T=min_T))
    out, score = jax.block_until_ready(fwd(x, memory, gumbel))

    assert out.shape == (b, hdim, h, w), out.shape
    assert score.shape == (b * h * w, kdim), score.shape

    ref_out, ref_score = reference_forward(x, memory, gumbel, min_T)
    ref_out = jax.block_until_ready(ref_out)

    if not jnp.allclose(score, ref_score, rtol=1e-3, atol=1e-3):
        raise AssertionError("Pallas score mismatch vs reference")
    if not jnp.allclose(out, ref_out, rtol=1e-3, atol=1e-3):
        raise AssertionError("Pallas output mismatch vs reference")

    print("KERNEL_OK")
</pallas_src>

<mosaic_0001>
module attributes {stable_mosaic.version = 11 : i64} {
  func.func @_l2norm_rows_kernel(%arg0: i32, %arg1: memref<128x128xf32, #tpu.memory_space<vmem>>, %arg2: memref<128x128xf32, #tpu.memory_space<vmem>>) attributes {dimension_semantics = [#tpu.dimension_semantics<parallel>], iteration_bounds = array<i64: 2>, scalar_prefetch = 0 : i64, scratch_operands = 0 : i64, tpu.core_type = #tpu.core_type<tc>, window_params = [{transform_indices = @transform_0, window_bounds = array<i64: 128, 128>}, {transform_indices = @transform_1, window_bounds = array<i64: 128, 128>}]} {
    %c0 = arith.constant 0 : index
    %c0_0 = arith.constant 0 : index
    %0 = vector.load %arg1[%c0, %c0_0] : memref<128x128xf32, #tpu.memory_space<vmem>>, vector<128x128xf32>
    %1 = arith.mulf %0, %0 : vector<128x128xf32>
    %cst = arith.constant dense<0.000000e+00> : vector<128xf32>
    %2 = vector.multi_reduction <add>, %1, %cst [1] : vector<128x128xf32> to vector<128xf32>
    %3 = vector.shape_cast %2 : vector<128xf32> to vector<128x1xf32>
    %cst_1 = arith.constant 1.000000e-24 : f32
    %4 = vector.broadcast %cst_1 : f32 to vector<128x1xf32>
    %5 = arith.maximumf %3, %4 : vector<128x1xf32>
    %6 = math.rsqrt %5 : vector<128x1xf32>
    %7 = vector.broadcast %6 : vector<128x1xf32> to vector<128x128xf32>
    %8 = arith.mulf %0, %7 : vector<128x128xf32>
    %c0_2 = arith.constant 0 : index
    %c0_3 = arith.constant 0 : index
    %9 = vector.load %arg2[%c0_2, %c0_3] : memref<128x128xf32, #tpu.memory_space<vmem>>, vector<128x128xf32>
    tpu.vector_store %arg2[%c0_2, %c0_3], %8 {strides = array<i32>} : memref<128x128xf32, #tpu.memory_space<vmem>>, vector<128x128xf32>,
    return
  }
  func.func @transform_0(%arg0: i32) -> (i32, i32) {
    %c0_i32 = arith.constant 0 : i32
    %c0_i32_0 = arith.constant 0 : i32
    return %arg0, %c0_i32 : i32, i32
  }
  func.func @transform_1(%arg0: i32) -> (i32, i32) {
    %c0_i32 = arith.constant 0 : i32
    %c0_i32_0 = arith.constant 0 : i32
    return %arg0, %c0_i32 : i32, i32
  }
}

module attributes {stable_mosaic.version = 11 : i64} {
  func.func @_memory_lookup_kernel(%arg0: i32, %arg1: memref<256x128xf32, #tpu.memory_space<vmem>>, %arg2: memref<256x256xf32, #tpu.memory_space<vmem>>, %arg3: memref<128x256xf32, #tpu.memory_space<vmem>>, %arg4: memref<256x128xf32, #tpu.memory_space<vmem>>, %arg5: memref<256x256xf32, #tpu.memory_space<vmem>>, %arg6: memref<256x128xf32, #tpu.memory_space<vmem>>) attributes {dimension_semantics = [#tpu.dimension_semantics<parallel>], iteration_bounds = array<i64: 2>, scalar_prefetch = 0 : i64, scratch_operands = 0 : i64, tpu.core_type = #tpu.core_type<tc>, window_params = [{transform_indices = @transform_0, window_bounds = array<i64: 256, 128>}, {transform_indices = @transform_1, window_bounds = array<i64: 256, 256>}, {pipeline_mode = #tpu.pipeline_mode<synchronous>, transform_indices = @transform_2, window_bounds = array<i64: 128, 256>}, {pipeline_mode = #tpu.pipeline_mode<synchronous>, transform_indices = @transform_3, window_bounds = array<i64: 256, 128>}, {transform_indices = @transform_4, window_bounds = array<i64: 256, 256>}, {transform_indices = @transform_5, window_bounds = array<i64: 256, 128>}]} {
    %c0 = arith.constant 0 : index
    %c0_0 = arith.constant 0 : index
    %0 = vector.load %arg1[%c0, %c0_0] : memref<256x128xf32, #tpu.memory_space<vmem>>, vector<256x128xf32>
    %1 = arith.mulf %0, %0 : vector<256x128xf32>
    %cst = arith.constant dense<0.000000e+00> : vector<256xf32>
    %2 = vector.multi_reduction <add>, %1, %cst [1] : vector<256x128xf32> to vector<256xf32>
    %3 = vector.shape_cast %2 : vector<256xf32> to vector<256x1xf32>
    %cst_1 = arith.constant 1.000000e-24 : f32
    %4 = vector.broadcast %cst_1 : f32 to vector<256x1xf32>
    %5 = arith.maximumf %3, %4 : vector<256x1xf32>
    %6 = math.rsqrt %5 : vector<256x1xf32>
    %7 = vector.broadcast %6 : vector<256x1xf32> to vector<256x128xf32>
    %8 = arith.mulf %0, %7 : vector<256x128xf32>
    %c0_2 = arith.constant 0 : index
    %c0_3 = arith.constant 0 : index
    %9 = vector.load %arg3[%c0_2, %c0_3] : memref<128x256xf32, #tpu.memory_space<vmem>>, vector<128x256xf32>
    %cst_4 = arith.constant dense<0.000000e+00> : vector<256x256xf32>
    %10 = tpu.matmul %8, %9, %cst_4 {dimension_numbers = #tpu.dot_dimension_numbers<[1], [0], [0], [1], [0, 0, 1, 1], [], []>} : vector<256x128xf32>, vector<128x256xf32>, vector<256x256xf32> -> vector<256x256xf32>
    %c0_5 = arith.constant 0 : index
    %c0_6 = arith.constant 0 : index
    %11 = vector.load %arg5[%c0_5, %c0_6] : memref<256x256xf32, #tpu.memory_space<vmem>>, vector<256x256xf32>
    tpu.vector_store %arg5[%c0_5, %c0_6], %10 {strides = array<i32>} : memref<256x256xf32, #tpu.memory_space<vmem>>, vector<256x256xf32>,
    %c0_7 = arith.constant 0 : index
    %c0_8 = arith.constant 0 : index
    %12 = vector.load %arg2[%c0_7, %c0_8] : memref<256x256xf32, #tpu.memory_space<vmem>>, vector<256x256xf32>
    %13 = arith.addf %10, %12 : vector<256x256xf32>
    %cst_9 = arith.constant 33.3333321 : f32
    %14 = vector.broadcast %cst_9 : f32 to vector<256x256xf32>
    %15 = arith.mulf %13, %14 : vector<256x256xf32>
    %cst_10 = arith.constant dense<0xFF800000> : vector<256xf32>
    %16 = vector.multi_reduction <maximumf>, %15, %cst_10 [1] : vector<256x256xf32> to vector<256xf32>
    %17 = vector.shape_cast %16 : vector<256xf32> to vector<256x1xf32>
    %18 = tpu.iota {dimensions = array<i32: 1>} : vector<256x256xi32>
    %19 = arith.sitofp %18 : vector<256x256xi32> to vector<256x256xf32>
    %20 = vector.broadcast %17 : vector<256x1xf32> to vector<256x256xf32>
    %21 = arith.cmpf oeq, %15, %20 : vector<256x256xf32>
    %cst_11 = arith.constant 2.560000e+02 : f32
    %22 = vector.broadcast %cst_11 : f32 to vector<256x256xf32>
    %23 = arith.select %21, %19, %22 : vector<256x256xi1>, vector<256x256xf32>
    %cst_12 = arith.constant dense<0x7F800000> : vector<256xf32>
    %24 = vector.multi_reduction <minimumf>, %23, %cst_12 [1] : vector<256x256xf32> to vector<256xf32>
    %25 = vector.shape_cast %24 : vector<256xf32> to vector<256x1xf32>
    %26 = vector.broadcast %25 : vector<256x1xf32> to vector<256x256xf32>
    %27 = arith.cmpf oeq, %19, %26 : vector<256x256xf32>
    %28 = arith.extui %27 : vector<256x256xi1> to vector<256x256xi32>
    %29 = arith.sitofp %28 : vector<256x256xi32> to vector<256x256xf32>
    %c0_13 = arith.constant 0 : index
    %c0_14 = arith.constant 0 : index
    %30 = vector.load %arg4[%c0_13, %c0_14] : memref<256x128xf32, #tpu.memory_space<vmem>>, vector<256x128xf32>
    %cst_15 = arith.constant dense<0.000000e+00> : vector<256x128xf32>
    %31 = tpu.matmul %29, %30, %cst_15 {dimension_numbers = #tpu.dot_dimension_numbers<[1], [0], [0], [1], [0, 0, 1, 1], [], []>} : vector<256x256xf32>, vector<256x128xf32>, vector<256x128xf32> -> vector<256x128xf32>
    %c0_16 = arith.constant 0 : index
    %c0_17 = arith.constant 0 : index
    %32 = vector.load %arg6[%c0_16, %c0_17] : memref<256x128xf32, #tpu.memory_space<vmem>>, vector<256x128xf32>
    tpu.vector_store %arg6[%c0_16, %c0_17], %31 {strides = array<i32>} : memref<256x128xf32, #tpu.memory_space<vmem>>, vector<256x128xf32>,
    return
  }
  func.func @transform_0(%arg0: i32) -> (i32, i32) {
    %c0_i32 = arith.constant 0 : i32
    %c0_i32_0 = arith.constant 0 : i32
    return %arg0, %c0_i32 : i32, i32
  }
  func.func @transform_1(%arg0: i32) -> (i32, i32) {
    %c0_i32 = arith.constant 0 : i32
    %c0_i32_0 = arith.constant 0 : i32
    return %arg0, %c0_i32 : i32, i32
  }
  func.func @transform_2(%arg0: i32) -> (i32, i32) {
    %c0_i32 = arith.constant 0 : i32
    %c0_i32_0 = arith.constant 0 : i32
    %c0_i32_1 = arith.constant 0 : i32
    return %c0_i32, %c0_i32_0 : i32, i32
  }
  func.func @transform_3(%arg0: i32) -> (i32, i32) {
    %c0_i32 = arith.constant 0 : i32
    %c0_i32_0 = arith.constant 0 : i32
    %c0_i32_1 = arith.constant 0 : i32
    return %c0_i32, %c0_i32_0 : i32, i32
  }
  func.func @transform_4(%arg0: i32) -> (i32, i32) {
    %c0_i32 = arith.constant 0 : i32
    %c0_i32_0 = arith.constant 0 : i32
    return %arg0, %c0_i32 : i32, i32
  }
  func.func @transform_5(%arg0: i32) -> (i32, i32) {
    %c0_i32 = arith.constant 0 : i32
    %c0_i32_0 = arith.constant 0 : i32
    return %arg0, %c0_i32 : i32, i32
  }
}

</mosaic_0001>

<bundles_post_ra>
// kernel: memory_block_forward.2
= control target key start
LH: loop header
LB: loop body
LE: loop exit
PB: predicated region body
PF: predicated region fallthrough
CT: control target
= control target key end

     0   :  { %6 = vsyncpa [#allocation3], 0  ;;  %s723_s0 = inlined_call_operand.hbm [shape: f32[256,128], index: 0, kind: input, shape index: {}]   ;;  %s724_s1 = inlined_call_operand.vmem [shape: f32[256,128], index: 1, kind: output, shape index: {}]  }
   0x1   :  { %8 = vsyncpa [#allocation3 + $0x1], 0  ;;  %s500_s6 = smov 0   ;;  %s502_s7 = smov 0  }
   0x2   :  { %s504_s8 = smov 0   ;;  %s506_s9 = smov 0  }
   0x3 LB: > { %s334_s10 = sadd.s32 4294967295, %s485_s9   ;;  %s520_s11 = sadd.s32 1, %s485_s9   ;;  %s485_s9 = sphi %s506_s9, %s731_s9   ;;  %s481_s8 = sphi %s504_s8, %s730_s8   ;;  %s477_s7 = sphi %s502_s7, %s729_s7   ;;  %s473_s6 = sphi %s500_s6, %s728_s6  }
   0x4   : > { %s18_s12 = ssub.s32 %s485_s9, %s520_s11  ;;  %s21_s13 = sadd.s32 1, %s481_s8 }
   0x5   : > { %p19_p0 = scmp.eq.s32.totalorder %s18_s12, 0  ;;  %p28_p1 = scmp.ne.s32.totalorder %s481_s8, %s477_s7 }
   0x6   : > { %p29_p2 = scmp.eq.s32.totalorder %s485_s9, 0  ;;  %p34_p3 = scmp.ne.s32.totalorder %s477_s7, %s473_s6 }
   0x7   : > { %s530_s14 = scalar_select %p19_p0, %s481_s8, %s21_s13  }
   0x8   : > { %p30_p4 = por %p29_p2, %p28_p1  ;;  %p35_p5 = scmp.eq.s32.totalorder %s334_s10, 0 }
   0x9   : > { %p354_p6 = scmp.lt.s32.totalorder %s485_s9, 2  ;;  %s84_s16 = sand.u32 1, %s481_s8  }
   0xa   : > { %p535_p7 = por %p35_p5, %p34_p3  ;;  %s338_s17 = sshll.u32 %s84_s16, 7 }
   0xb   : > { %s347_s18 = sshll.u32 %s485_s9, 11  ;;  %s88_s22 = scalar_lea.vmem [#allocation2], %s338_s17 }
   0xc   : > { %s544_s21 = scalar_lea.hbm %s723_s0, %s347_s18  ;;  %s95_s23 = sshll.u32 %s88_s22, 4  ;;  %s546_s23 = int_to_ptr.vmem [resolvable:$true] %s95_s23 }
   0xd   : > { %p548_p8 = pnand %p354_p6, %p30_p4  ;;  %s553_s25 = scalar_lea.sflag [#allocation3], %s84_s16 }
   0xe   : > { %s421_s26 = scalar_lea.hbm %s544_s21, 2048  ;;  %s426_s29 = scalar_lea.hbm %s723_s0, 4096 }
   0xf   : > { %p422_p10 = scmp.ne.s32.totalorder %s544_s21, %s421_s26  ;;  %p423_p11 = pneg %p548_p8 }
  0x10   : > { %p427_p0 = scmp.lt.u32.totalorder %s544_s21, %s723_s0  ;;  %p428_p1 = scmp.lt.u32.totalorder %s426_s29, %s421_s26 }
  0x11   : > { %p424_p12 = pnand %p423_p11, %p422_p10  ;;  %p430_p3 = scmp.lt.u32.totalorder %s421_s26, %s544_s21 }
  0x12   : > { %p429_p2 = por %p428_p1, %p427_p0 }
  0x13   : > { %p425_p13 = pneg %p424_p12 }
  0x14   : > { %p431_p4 = por %p430_p3, %p429_p2 }
  0x16   : > { %p432_p5 = pnand %p431_p4, %p425_p13 }
  0x18   : > { %435 = shalt.err (!%p432_p5)
}
  0x19   : > { %s436_s3 = scalar_lea.vmem %s546_s23, 2048  ;;  %s487_s4 = smov [#allocation2]  }
  0x1a   : > { %p437_p6 = scmp.ne.s32.totalorder %s546_s23, %s436_s3  ;;  %s441_s5 = sshll.u32 %s487_s4, 4  ;;  %s442_s5 = int_to_ptr.vmem [resolvable:$false] %s441_s5 }
  0x1b   : > { %s443_s6 = scalar_lea.vmem %s442_s5, 4096  ;;  %p444_p9 = scmp.lt.s32.totalorder %s546_s23, %s442_s5 }
  0x1c   : > { %p439_p10 = pnand %p437_p6, %p423_p11  ;;  %p445_p0 = scmp.lt.s32.totalorder %s443_s6, %s436_s3 }
  0x1e   : > { %p440_p12 = pneg %p439_p10  ;;  %p446_p1 = por %p445_p0, %p444_p9 }
  0x20   : > { %p447_p2 = pnand %p446_p1, %p440_p12 }
  0x22   : > { %450 = shalt.err (!%p447_p2)
}
  0x23   : > { %s488_s12 = smov 128   ;;  %s489_s13 = smov 8  }
  0x24   : > { %353 = dma.hbm_to_vmem [thread:$0]  (!%p548_p8), %s544_s21, 2048, %s546_s23, %s553_s25, %s488_s12, %s488_s12, %s489_s13  }
  0x25   : > { %p103_p11 = scmp.lt.s32.totalorder %s485_s9, 3  ;;  %p727_p13 = scmp.ge.s32.totalorder %s485_s9, 1 }
  0x27   : > { %p104_p3 = pnand %p727_p13, %p103_p11 }
  0x28   : > { %s109_s16 = sand.u32 (!%p104_p3), 1, %s477_s7  }
  0x29   : > { %107 = sbr.rel (%p104_p3) target bundleno = 239 (0xef), region = 24  ;;  %s342_s17 = sshll.u32 (!%p104_p3), %s109_s16, 7 }
  0x2a   : > { %s110_s18 = scalar_lea.sflag (!%p104_p3), [#allocation3], %s109_s16  ;;  %s585_s19 = scalar_lea.vmem (!%p104_p3), [#allocation2], %s342_s17 }
  0x30   : > { %468 = dma.done.wait (%p535_p7), %s110_s18, 2048  }
  0x31   : > { %470 = vsyncadd (%p535_p7), %s110_s18, 4294965248  ;;  %v592_v0 = vld [vmem:[%s585_s19 + $0x10] sm:$0xff]  ;;  %v595_v1 = vld [vmem:[%s585_s19] sm:$0xff]  ;;  %s343_s15 = sshll.u32 %s334_s10, 4 }
  0x32   : > { %v598_v2 = vld [vmem:[%s585_s19 + $0x18] sm:$0xff]  ;;  %v157_v3 = vmul.f32 %v592_v0, %v592_v0  ;;  %v155_v4 = vmul.f32 %v595_v1, %v595_v1  ;;  %v605_v5 = vld [vmem:[%s585_s19 + $0x8] sm:$0xff]  ;;  %v615_v9 = vld [vmem:[%s585_s19 + $0x20] sm:$0xff]  ;;  %p134_p7 = scmp.lt.s32.totalorder %s343_s15, 31 }
  0x33   : > { %v158_v6 = vmul.f32 %v598_v2, %v598_v2  ;;  %v156_v7 = vmul.f32 %v605_v5, %v605_v5  ;;  %v612_v8 = vld [vmem:[%s585_s19 + $0x28] sm:$0xff]  ;;  %v159_v11 = vmul.f32 %v615_v9, %v615_v9  ;;  %v622_v12 = vld [vmem:[%s585_s19 + $0x38] sm:$0xff]  ;;  %v625_v13 = vld [vmem:[%s585_s19 + $0x30] sm:$0xff] }
  0x34   : > { %175 = vadd.xlane.f32.xlu1 %v157_v3  ;;  %171 = vadd.xlane.f32.xlu0 %v155_v4  ;;  %v160_v10 = vmul.f32 %v612_v8, %v612_v8  ;;  %v162_v14 = vmul.f32 %v622_v12, %v622_v12  ;;  %v161_v15 = vmul.f32 %v625_v13, %v625_v13  ;;  %v632_v16 = vld [vmem:[%s585_s19 + $0x48] sm:$0xff]  ;;  %v635_v17 = vld [vmem:[%s585_s19 + $0x40] sm:$0xff]  ;;  %v642_v20 = vld [vmem:[%s585_s19 + $0x58] sm:$0xff]  ;;  %s733_s15 = smov (!%p134_p7, %s343_s15), 31 }
  0x35   : > { %v164_v18 = vmul.f32 %v632_v16, %v632_v16  ;;  %v163_v19 = vmul.f32 %v635_v17, %v635_v17  ;;  %v645_v21 = vld [vmem:[%s585_s19 + $0x50] sm:$0xff]  ;;  %v166_v22 = vmul.f32 %v642_v20, %v642_v20  ;;  %v652_v24 = vld [vmem:[%s585_s19 + $0x68] sm:$0xff]  ;;  %v655_v25 = vld [vmem:[%s585_s19 + $0x60] sm:$0xff]  ;;  %s344_s9 = sshll.u32 %s733_s15, 3 }
  0x36   : > { %v165_v23 = vmul.f32 %v645_v21, %v645_v21  ;;  %v168_v26 = vmul.f32 %v652_v24, %v652_v24  ;;  %v167_v27 = vmul.f32 %v655_v25, %v655_v25  ;;  %v662_v28 = vld [vmem:[%s585_s19 + $0x78] sm:$0xff]  ;;  %v665_v29 = vld [vmem:[%s585_s19 + $0x70] sm:$0xff]  ;;  %s676_s21 = scalar_lea.vmem %s724_s1, %s344_s9 }
  0x37   : > { %v170_v30 = vmul.f32 %v662_v28, %v662_v28  ;;  %v169_v31 = vmul.f32 %v665_v29, %v665_v29 }
  0x38   : > { %177 = vadd.xlane.f32.xlu1 %v158_v6  ;;  %173 = vadd.xlane.f32.xlu0 %v156_v7 }
  0x3c   : > { %181 = vadd.xlane.f32.xlu1 %v160_v10  ;;  %179 = vadd.xlane.f32.xlu0 %v159_v11 }
  0x40   : > { %185 = vadd.xlane.f32.xlu1 %v162_v14  ;;  %183 = vadd.xlane.f32.xlu0 %v161_v15 }
  0x44   : > { %189 = vadd.xlane.f32.xlu1 %v164_v18  ;;  %187 = vadd.xlane.f32.xlu0 %v163_v19 }
  0x48   : > { %193 = vadd.xlane.f32.xlu1 %v166_v22  ;;  %191 = vadd.xlane.f32.xlu0 %v165_v23 }
  0x4c   : > { %197 = vadd.xlane.f32.xlu1 %v168_v26  ;;  %195 = vadd.xlane.f32.xlu0 %v167_v27 }
  0x50   : > { %201 = vadd.xlane.f32.xlu1 %v170_v30  ;;  %199 = vadd.xlane.f32.xlu0 %v169_v31 }
  0xc1   : > { %v176_v32 = vpop.xlane.xlu1 %175  ;;  %v172_v33 = vpop.xlane.xlu0 %171 }
  0xc2   : > { %v205_v34 = vmax.f32 %v176_v32, 1e-24  ;;  %v203_v35 = vmax.f32 %v172_v33, 1e-24 }
  0xc4   : > { %389 = vrsqrt.f32 %v205_v34 }
  0xc5   : > { %391 = vrsqrt.f32 %v203_v35  ;;  %v178_v36 = vpop.xlane.xlu1 %177  ;;  %v174_v37 = vpop.xlane.xlu0 %173 }
  0xc6   : > { %v206_v38 = vmax.f32 %v178_v36, 1e-24  ;;  %v204_v39 = vmax.f32 %v174_v37, 1e-24 }
  0xc8   : > { %393 = vrsqrt.f32 %v206_v38 }
  0xc9   : > { %395 = vrsqrt.f32 %v204_v39  ;;  %v182_v40 = vpop.xlane.xlu1 %181  ;;  %v180_v41 = vpop.xlane.xlu0 %179 }
  0xca   : > { %v208_v42 = vmax.f32 %v182_v40, 1e-24  ;;  %v207_v43 = vmax.f32 %v180_v41, 1e-24 }
  0xcc   : > { %397 = vrsqrt.f32 %v208_v42 }
  0xcd   : > { %399 = vrsqrt.f32 %v207_v43  ;;  %v186_v44 = vpop.xlane.xlu1 %185  ;;  %v184_v45 = vpop.xlane.xlu0 %183 }
  0xce   : > { %v390_v46 = vpop.eup %389  ;;  %v210_v47 = vmax.f32 %v186_v44, 1e-24  ;;  %v209_v48 = vmax.f32 %v184_v45, 1e-24 }
  0xcf   : > { %v392_v49 = vpop.eup %391  ;;  %v237_v50 = vmul.f32 %v390_v46, %v592_v0 }
  0xd0   : > { %v235_v51 = vmul.f32 %v392_v49, %v595_v1  ;;  %401 = vrsqrt.f32 %v210_v47 }
  0xd1   : > { %253 = vst [vmem:[%s676_s21 + $0x10] sm:$0xff] %v237_v50  ;;  %403 = vrsqrt.f32 %v209_v48  ;;  %v190_v52 = vpop.xlane.xlu1 %189  ;;  %v188_v53 = vpop.xlane.xlu0 %187 }
  0xd2   : > { %v394_v54 = vpop.eup %393  ;;  %251 = vst [vmem:[%s676_s21] sm:$0xff] %v235_v51  ;;  %v212_v55 = vmax.f32 %v190_v52, 1e-24  ;;  %v211_v56 = vmax.f32 %v188_v53, 1e-24 }
  0xd3   : > { %v396_v57 = vpop.eup %395  ;;  %v238_v58 = vmul.f32 %v394_v54, %v598_v2 }
  0xd4   : > { %v236_v59 = vmul.f32 %v396_v57, %v605_v5  ;;  %405 = vrsqrt.f32 %v212_v55 }
  0xd5   : > { %254 = vst [vmem:[%s676_s21 + $0x18] sm:$0xff] %v238_v58  ;;  %407 = vrsqrt.f32 %v211_v56  ;;  %v194_v60 = vpop.xlane.xlu1 %193  ;;  %v192_v61 = vpop.xlane.xlu0 %191 }
  0xd6   : > { %v398_v62 = vpop.eup %397  ;;  %252 = vst [vmem:[%s676_s21 + $0x8] sm:$0xff] %v236_v59  ;;  %v214_v63 = vmax.f32 %v194_v60, 1e-24  ;;  %v213_v0 = vmax.f32 %v192_v61, 1e-24 }
  0xd7   : > { %v400_v1 = vpop.eup %399  ;;  %v240_v3 = vmul.f32 %v398_v62, %v612_v8 }
  0xd8   : > { %v239_v4 = vmul.f32 %v400_v1, %v615_v9  ;;  %409 = vrsqrt.f32 %v214_v63 }
  0xd9   : > { %256 = vst [vmem:[%s676_s21 + $0x28] sm:$0xff] %v240_v3  ;;  %411 = vrsqrt.f32 %v213_v0  ;;  %v198_v2 = vpop.xlane.xlu1 %197  ;;  %v196_v5 = vpop.xlane.xlu0 %195 }
  0xda   : > { %v402_v6 = vpop.eup %401  ;;  %255 = vst [vmem:[%s676_s21 + $0x20] sm:$0xff] %v239_v4  ;;  %v216_v7 = vmax.f32 %v198_v2, 1e-24  ;;  %v215_v10 = vmax.f32 %v196_v5, 1e-24 }
  0xdb   : > { %v404_v11 = vpop.eup %403  ;;  %v242_v14 = vmul.f32 %v402_v6, %v622_v12 }
  0xdc   : > { %v241_v15 = vmul.f32 %v404_v11, %v625_v13  ;;  %413 = vrsqrt.f32 %v216_v7 }
  0xdd   : > { %258 = vst [vmem:[%s676_s21 + $0x38] sm:$0xff] %v242_v14  ;;  %415 = vrsqrt.f32 %v215_v10  ;;  %v202_v8 = vpop.xlane.xlu1 %201  ;;  %v200_v9 = vpop.xlane.xlu0 %199 }
  0xde   : > { %v406_v18 = vpop.eup %405  ;;  %257 = vst [vmem:[%s676_s21 + $0x30] sm:$0xff] %v241_v15  ;;  %v218_v19 = vmax.f32 %v202_v8, 1e-24  ;;  %v217_v22 = vmax.f32 %v200_v9, 1e-24 }
  0xdf   : > { %v408_v23 = vpop.eup %407  ;;  %v244_v26 = vmul.f32 %v406_v18, %v632_v16 }
  0xe0   : > { %v243_v12 = vmul.f32 %v408_v23, %v635_v17  ;;  %417 = vrsqrt.f32 %v218_v19 }
  0xe1   : > { %260 = vst [vmem:[%s676_s21 + $0x48] sm:$0xff] %v244_v26  ;;  %419 = vrsqrt.f32 %v217_v22 }
  0xe2   : > { %v410_v13 = vpop.eup %409  ;;  %259 = vst [vmem:[%s676_s21 + $0x40] sm:$0xff] %v243_v12 }
  0xe3   : > { %v412_v27 = vpop.eup %411  ;;  %v246_v30 = vmul.f32 %v410_v13, %v642_v20 }
  0xe4   : > { %v245_v31 = vmul.f32 %v412_v27, %v645_v21 }
  0xe5   : > { %262 = vst [vmem:[%s676_s21 + $0x58] sm:$0xff] %v246_v30 }
  0xe6   : > { %v414_v32 = vpop.eup %413  ;;  %261 = vst [vmem:[%s676_s21 + $0x50] sm:$0xff] %v245_v31 }
  0xe7   : > { %v416_v16 = vpop.eup %415  ;;  %v248_v33 = vmul.f32 %v414_v32, %v652_v24 }
  0xe8   : > { %v247_v17 = vmul.f32 %v416_v16, %v655_v25 }
  0xe9   : > { %264 = vst [vmem:[%s676_s21 + $0x68] sm:$0xff] %v248_v33 }
  0xea   : > { %v418_v34 = vpop.eup %417  ;;  %263 = vst [vmem:[%s676_s21 + $0x60] sm:$0xff] %v247_v17 }
  0xeb   : > { %v420_v35 = vpop.eup %419  ;;  %v250_v36 = vmul.f32 %v418_v34, %v662_v28 }
  0xec   : > { %v249_v37 = vmul.f32 %v420_v35, %v665_v29 }
  0xed   : > { %266 = vst [vmem:[%s676_s21 + $0x78] sm:$0xff] %v250_v36 }
  0xee   : > { %265 = vst [vmem:[%s676_s21 + $0x70] sm:$0xff] %v249_v37 }
  0xef PF: > { %p11_p8 = scmp.ge.s32.totalorder %s520_s11, 4   ;;  %s728_s6 = smov %s477_s7 }
  0xf0   : > { %s729_s7 = smov %s481_s8  ;;  %s730_s8 = smov %s530_s14 }
  0xf1   : > { %s731_s9 = smov %s520_s11  ;;  %13 = sbr.rel (!%p11_p8) target bundleno = 3 (0x3), region = 64 }
  0xf8   :  { %289 = vsyncpa [#allocation3], 1 }
  0xf9   :  { %291 = vsyncpa [#allocation3 + $0x1], 1 }

// kernel: memory_block_forward.3
= control target key start
LH: loop header
LB: loop body
LE: loop exit
PB: predicated region body
PF: predicated region fallthrough
CT: control target
= control target key end

     0   :  { %11 = vsyncpa [#allocation3], 0  ;;  %s3914_s0 = inlined_call_operand.hbm [shape: f32[512,128], index: 0, kind: input, shape index: {}]   ;;  %s3915_s1 = inlined_call_operand.vmem [shape: f32[512,256], index: 1, kind: input, shape index: {}]   ;;  %s3916_s2 = inlined_call_operand.vmem [shape: f32[128,256], index: 2, kind: input, shape index: {}]   ;;  %s3917_s3 = inlined_call_operand.hbm [shape: f32[256,128], index: 3, kind: input, shape index: {}]   ;;  %s3918_s4 = inlined_call_operand.hbm [shape: f32[512,256], index: 4, kind: output, shape index: {0}]   ;;  %s3919_s5 = inlined_call_operand.hbm [shape: f32[512,128], index: 5, kind: output, shape index: {1}]  }
   0x1   :  { %13 = vsyncpa [#allocation3 + $0x1], 0 }
   0x2   :  { %14 = vsyncpa [#allocation6], 0 }
   0x3   :  { %15 = vsyncpa [#allocation4], 0 }
   0x4   :  { %17 = vsyncpa [#allocation4 + $0x1], 0 }
   0x5   :  { %18 = vsyncpa [#allocation9], 0 }
   0x6   :  { %20 = vsyncpa [#allocation9 + $0x1], 0  ;;  %s2646_s18 = smov 0   ;;  %s2648_s19 = smov 0  }
   0x7   :  { %s2650_s20 = smov 0   ;;  %s2652_s21 = smov 0  }
   0x8 LB: > { %s2667_s22 = sadd.s32 4294967295, %s2601_s21   ;;  %s2035_s23 = sadd.s32 4294967294, %s2601_s21   ;;  %s2601_s21 = sphi %s2652_s21, %s3975_s21   ;;  %s2597_s20 = sphi %s2650_s20, %s3974_s20   ;;  %s2593_s19 = sphi %s2648_s19, %s3973_s19   ;;  %s2589_s18 = sphi %s2646_s18, %s3972_s18  }
   0x9   : > { %p46_p0 = scmp.ne.s32.totalorder %s2593_s19, %s2589_s18  ;;  %p3920_p1 = scmp.eq.s32.totalorder %s2667_s22, 0 }
   0xa   : > { %p144_p3 = scmp.eq.s32.totalorder %s2035_s23, 1  ;;  %p2036_p5 = scmp.ge.s32.totalorder %s2601_s21, 1 }
   0xb   : > { %p2676_p4 = por %p3920_p1, %p46_p0  ;;  %p177_p7 = scmp.lt.s32.totalorder %s2601_s21, 3 }
   0xc   : > { %p2681_p6 = por %p144_p3, %p46_p0  ;;  %s2603_s27 = smov [#allocation5]  }
   0xd   : > { %s3935_s24 = scalar_select %p2676_p4, 1, 0 }
   0xe   : > { %s3936_s25 = scalar_select %p2681_p6, 1, 0 }
   0xf   : > { %p2686_p8 = pnand %p2036_p5, %p177_p7  ;;  %s192_s28 = sshll.u32 %s2603_s27, 4  ;;  %s2690_s28 = int_to_ptr.vmem [resolvable:$true] %s192_s28 }
  0x10   : > { %s2702_s30 = sadd.s32 1, %s2601_s21   ;;  %s33_s6 = sadd.s32 1, %s2597_s20 }
  0x11   : > { %s3937_s26 = scalar_select %p2686_p8, 1, 0 }
  0x12   : > { %p2314_p9 = pneg %p2686_p8  ;;  %s30_s7 = ssub.s32 %s2601_s21, %s2702_s30 }
  0x13   : > { %s2441_s10 = scalar_lea.hbm %s3917_s3, 4096 }
  0x14   : > { %p2697_p11 = pnand %p2314_p9, %p3920_p1  ;;  %p2442_p12 = scmp.ne.s32.totalorder %s3917_s3, %s2441_s10 }
  0x15   : > { %p2448_p5 = scmp.lt.u32.totalorder %s2441_s10, %s3917_s3 }
  0x16   : > { %p2443_p13 = pneg %p2697_p11 }
  0x18   : > { %p2444_p0 = pnand %p2443_p13, %p2442_p12 }
  0x1a   : > { %p2445_p3 = pneg %p2444_p0 }
  0x1c   : > { %p2450_p7 = pnand %p2448_p5, %p2445_p3 }
  0x1e   : > { %2453 = shalt.err (!%p2450_p7)
}
  0x1f   : > { %s2454_s15 = scalar_lea.vmem %s2690_s28, 4096  ;;  %p2462_p2 = scmp.lt.s32.totalorder %s2690_s28, %s2690_s28 }
  0x20   : > { %p2455_p9 = scmp.ne.s32.totalorder %s2690_s28, %s2454_s15  ;;  %p2463_p6 = scmp.lt.s32.totalorder %s2454_s15, %s2454_s15 }
  0x22   : > { %p2457_p10 = pnand %p2455_p9, %p2443_p13  ;;  %p2464_p4 = por %p2463_p6, %p2462_p2 }
  0x24   : > { %p2458_p1 = pneg %p2457_p10 }
  0x26   : > { %p2465_p8 = pnand %p2464_p4, %p2458_p1 }
  0x28   : > { %2468 = shalt.err (!%p2465_p8)
}
  0x29   : > { %s2604_s16 = smov 128   ;;  %s2605_s17 = smov 8  }
  0x2a   : > { %2317 = dma.hbm_to_vmem [thread:$0]  (!%p2697_p11), %s3917_s3, 4096, %s2690_s28, [#allocation6], %s2604_s16, %s2604_s16, %s2605_s17  }
  0x2b   : > { %p31_p1 = scmp.eq.s32.totalorder %s30_s7, 0  ;;  %p40_p2 = scmp.ne.s32.totalorder %s2597_s20, %s2593_s19 }
  0x2c   : > { %p41_p4 = scmp.eq.s32.totalorder %s2601_s21, 0  ;;  %p2330_p6 = scmp.lt.s32.totalorder %s2601_s21, 2 }
  0x2d   : > { %s2736_s8 = scalar_select %p31_p1, %s2597_s20, %s33_s6  }
  0x2e   : > { %p42_p8 = por %p41_p4, %p40_p2  ;;  %p3939_p10 = scmp.eq.s32.totalorder %s2667_s22, 1 }
  0x2f   : > { %s206_s29 = sand.u32 1, %s2597_s20   ;;  %s2187_s10 = sshll.u32 %s2601_s21, 12 }
  0x30   : > { %p2740_p12 = por %p3939_p10, %p40_p2  ;;  %s2039_s11 = sshll.u32 %s206_s29, 8 }
  0x31   : > { %s2749_s14 = scalar_lea.hbm %s3914_s0, %s2187_s10  ;;  %s210_s28 = scalar_lea.vmem [#allocation2], %s2039_s11 }
  0x32   : > { %s217_s6 = sshll.u32 %s210_s28, 4  ;;  %p2751_p11 = pnand %p2330_p6, %p42_p8  ;;  %s2755_s6 = int_to_ptr.vmem [resolvable:$true] %s217_s6 }
  0x33   : > { %s2757_s15 = scalar_lea.sflag [#allocation3], %s206_s29  ;;  %s2469_s23 = scalar_lea.hbm %s2749_s14, 4096 }
  0x34   : > { %p2470_p13 = scmp.ne.s32.totalorder %s2749_s14, %s2469_s23  ;;  %p2471_p0 = pneg %p2751_p11 }
  0x35   : > { %s2474_s11 = scalar_lea.hbm %s3914_s0, 8192  ;;  %p2475_p7 = scmp.lt.u32.totalorder %s2749_s14, %s3914_s0 }
  0x36   : > { %p2472_p3 = pnand %p2471_p0, %p2470_p13  ;;  %p2476_p9 = scmp.lt.u32.totalorder %s2474_s11, %s2469_s23 }
  0x37   : > { %p2478_p2 = scmp.lt.u32.totalorder %s2469_s23, %s2749_s14 }
  0x38   : > { %p2473_p5 = pneg %p2472_p3  ;;  %p2477_p1 = por %p2476_p9, %p2475_p7 }
  0x3a   : > { %p2479_p4 = por %p2478_p2, %p2477_p1 }
  0x3c   : > { %p2480_p6 = pnand %p2479_p4, %p2473_p5 }
  0x3e   : > { %2483 = shalt.err (!%p2480_p6)
}
  0x3f   : > { %s2484_s29 = scalar_lea.vmem %s2755_s6, 4096  ;;  %s2606_s28 = smov [#allocation2]  }
  0x40   : > { %p2485_p8 = scmp.ne.s32.totalorder %s2755_s6, %s2484_s29  ;;  %s2489_s27 = sshll.u32 %s2606_s28, 4  ;;  %s2490_s27 = int_to_ptr.vmem [resolvable:$false] %s2489_s27 }
  0x41   : > { %s2491_s10 = scalar_lea.vmem %s2490_s27, 8192  ;;  %p2492_p3 = scmp.lt.s32.totalorder %s2755_s6, %s2490_s27 }
  0x42   : > { %p2487_p10 = pnand %p2485_p8, %p2471_p0  ;;  %p2493_p7 = scmp.lt.s32.totalorder %s2491_s10, %s2484_s29 }
  0x44   : > { %p2488_p13 = pneg %p2487_p10  ;;  %p2494_p9 = por %p2493_p7, %p2492_p3 }
  0x46   : > { %p2495_p1 = pnand %p2494_p9, %p2488_p13 }
  0x48   : > { %2498 = shalt.err (!%p2495_p1)
}
  0x49   : > { %2321 = dma.hbm_to_vmem [thread:$0]  (!%p2751_p11), %s2749_s14, 4096, %s2755_s6, %s2757_s15, %s2604_s16, %s2604_s16, %s2605_s17  }
  0x4a   : > { %p3942_p0 = scmp.ne.s32.totalorder %s3937_s26, 0 }
  0x4c   : > { %239 = sbr.rel (%p3942_p0) target bundleno = 1180 (0x49c), region = 36 }
  0x53   : > { %s2791_s23 = sand.u32 1, %s2593_s19   ;;  %p3943_p5 = scmp.ne.s32.totalorder %s3935_s24, 0 }
  0x54   : > { %s2043_s11 = sshll.u32 %s2791_s23, 8  ;;  %s242_s12 = scalar_lea.sflag [#allocation3], %s2791_s23 }
  0x55   : > { %s2797_s7 = scalar_lea.vmem [#allocation2], %s2043_s11 }
  0x56   : > { %2572 = dma.done.wait (%p3943_p5), %s242_s12, 4096  }
  0x57   : > { %2574 = vsyncadd (%p3943_p5), %s242_s12, 4294963200  ;;  %p3944_p11 = scmp.eq.s32.totalorder %s2667_s22, 0 }
  0x59   : > { %2576 = dma.done.wait (%p3944_p11), [#allocation6], 4096   ;;  %p3945_p2 = pmov %p3944_p11 }
  0x5a   : > { %v2808_v0 = vld [vmem:[%s2797_s7] sm:$0xff]  ;;  %v2811_v1 = vld [vmem:[%s2797_s7 + $0x8] sm:$0xff]  ;;  %v2814_v2 = vld [vmem:[%s2797_s7 + $0x10] sm:$0xff]  ;;  %v2607_v61 = vmov 0.0   ;;  %s2047_s12 = sshll.u32 %s2667_s22, 5  ;;  %s3796_s6 = scalar_lea.vmem [#allocation8], %s2043_s11 }
  0x5b   : > { %2578 = vsyncadd (%p3945_p2), [#allocation6], 4294963200  ;;  %v329_v3 = vmul.f32 %v2808_v0, %v2808_v0  ;;  %v331_v4 = vmul.f32 %v2814_v2, %v2814_v2  ;;  %v2821_v5 = vld [vmem:[%s2797_s7 + $0x18] sm:$0xff]  ;;  %v330_v6 = vmul.f32 %v2811_v1, %v2811_v1  ;;  %v2828_v8 = vld [vmem:[%s2797_s7 + $0x20] sm:$0xff]  ;;  %617 = vmatprep.mubr.f32.mxu0 %v2607_v61  ;;  %p289_p4 = scmp.lt.s32.totalorder %s2047_s12, 63  ;;  %s2190_s11 = sshll.u32 %s2667_s22, 13 }
  0x5c   : > { %v332_v7 = vmul.f32 %v2821_v5, %v2821_v5  ;;  %v2831_v9 = vld [vmem:[%s2797_s7 + $0x28] sm:$0xff]  ;;  %v333_v10 = vmul.f32 %v2828_v8, %v2828_v8  ;;  %v2838_v12 = vld [vmem:[%s2797_s7 + $0x30] sm:$0xff]  ;;  %v2841_v13 = vld [vmem:[%s2797_s7 + $0x38] sm:$0xff]  ;;  %s3816_s28 = scalar_lea.hbm %s3918_s4, %s2190_s11  ;;  %s1873_s27 = scalar_lea.sflag [#allocation4], %s2791_s23 }
  0x5d   : > { %361 = vadd.xlane.f32.xlu0 %v329_v3  ;;  %365 = vadd.xlane.f32.xlu1 %v331_v4  ;;  %v334_v11 = vmul.f32 %v2831_v9, %v2831_v9  ;;  %v2844_v14 = vld [vmem:[%s2797_s7 + $0x40] sm:$0xff]  ;;  %v522_v15 = vld [vmem:[%s3916_s2 + $0x8] sm:$0xff]  ;;  %v524_v16 = vld [vmem:[%s3916_s2 + $0x18] sm:$0xff]  ;;  %v335_v18 = vmul.f32 %v2838_v12, %v2838_v12  ;;  %v336_v19 = vmul.f32 %v2841_v13, %v2841_v13  ;;  %s3977_s12 = smov (!%p289_p4, %s2047_s12), 63 }
  0x5e   : > { %v521_v17 = vld [vmem:[%s3916_s2] sm:$0xff]  ;;  %v2192_v20 = vpack.c.bf16 %v524_v16, %v522_v15  ;;  %v523_v21 = vld [vmem:[%s3916_s2 + $0x10] sm:$0xff]  ;;  %v526_v22 = vld [vmem:[%s3916_s2 + $0x28] sm:$0xff]  ;;  %v337_v32 = vmul.f32 %v2844_v14, %v2844_v14  ;;  %s2188_s26 = sshll.u32 %s3977_s12, 4 }
  0x5f   : > { %v528_v23 = vld [vmem:[%s3916_s2 + $0x38] sm:$0xff]  ;;  %v2869_v24 = vld [vmem:[%s2797_s7 + $0x48] sm:$0xff]  ;;  %v2194_v25 = vpack.c.bf16 %v523_v21, %v521_v17  ;;  %v525_v27 = vld [vmem:[%s3916_s2 + $0x20] sm:$0xff]  ;;  %s3158_s14 = scalar_lea.vmem %s3915_s1, %s2188_s26 }
  0x60   : > { %v2196_v26 = vpack.c.bf16 %v528_v23, %v526_v22  ;;  %v527_v28 = vld [vmem:[%s3916_s2 + $0x30] sm:$0xff]  ;;  %2193 = vmatprep.subr.bf16.mxu0 %v2192_v20  ;;  %v530_v29 = vld [vmem:[%s3916_s2 + $0x48] sm:$0xff]  ;;  %v532_v30 = vld [vmem:[%s3916_s2 + $0x58] sm:$0xff]  ;;  %v338_v33 = vmul.f32 %v2869_v24, %v2869_v24 }
  0x61   : > { %363 = vadd.xlane.f32.xlu0 %v330_v6  ;;  %367 = vadd.xlane.f32.xlu1 %v332_v7  ;;  %v2198_v31 = vpack.c.bf16 %v527_v28, %v525_v27  ;;  %v529_v34 = vld [vmem:[%s3916_s2 + $0x40] sm:$0xff]  ;;  %v531_v35 = vld [vmem:[%s3916_s2 + $0x50] sm:$0xff]  ;;  %v2897_v37 = vld [vmem:[%s2797_s7 + $0x58] sm:$0xff]  ;;  %v2200_v38 = vpack.c.bf16 %v532_v30, %v530_v29 }
  0x62   : > { %2195 = vmatpush1.bf16.msra.mxu0 %v2194_v25  ;;  %v2894_v36 = vld [vmem:[%s2797_s7 + $0x50] sm:$0xff]  ;;  %v534_v39 = vld [vmem:[%s3916_s2 + $0x68] sm:$0xff]  ;;  %v536_v40 = vld [vmem:[%s3916_s2 + $0x78] sm:$0xff]  ;;  %v2202_v41 = vpack.c.bf16 %v531_v35, %v529_v34  ;;  %v340_v43 = vmul.f32 %v2897_v37, %v2897_v37 }
  0x63   : > { %2197 = vmatprep.subr.bf16.mxu0 %v2196_v26  ;;  %v339_v42 = vmul.f32 %v2894_v36, %v2894_v36  ;;  %v533_v44 = vld [vmem:[%s3916_s2 + $0x60] sm:$0xff]  ;;  %v535_v45 = vld [vmem:[%s3916_s2 + $0x70] sm:$0xff]  ;;  %v2919_v47 = vld [vmem:[%s2797_s7 + $0x68] sm:$0xff]  ;;  %v2204_v48 = vpack.c.bf16 %v536_v40, %v534_v39 }
  0x64   : > { %v2916_v46 = vld [vmem:[%s2797_s7 + $0x60] sm:$0xff]  ;;  %v538_v49 = vld [vmem:[%s3916_s2 + $0x88] sm:$0xff]  ;;  %v540_v50 = vld [vmem:[%s3916_s2 + $0x98] sm:$0xff]  ;;  %v2206_v51 = vpack.c.bf16 %v535_v45, %v533_v44  ;;  %v342_v53 = vmul.f32 %v2919_v47, %v2919_v47 }
  0x65   : > { %369 = vadd.xlane.f32.xlu0 %v333_v10  ;;  %371 = vadd.xlane.f32.xlu1 %v334_v11  ;;  %v341_v52 = vmul.f32 %v2916_v46, %v2916_v46  ;;  %v537_v54 = vld [vmem:[%s3916_s2 + $0x80] sm:$0xff]  ;;  %v539_v55 = vld [vmem:[%s3916_s2 + $0x90] sm:$0xff]  ;;  %v2941_v57 = vld [vmem:[%s2797_s7 + $0x78] sm:$0xff]  ;;  %v2208_v58 = vpack.c.bf16 %v540_v50, %v538_v49 }
  0x66   : > { %2199 = vmatpush1.bf16.msra.mxu0 %v2198_v31  ;;  %v2938_v56 = vld [vmem:[%s2797_s7 + $0x70] sm:$0xff]  ;;  %v542_v59 = vld [vmem:[%s3916_s2 + $0xa8] sm:$0xff]  ;;  %v544_v60 = vld [vmem:[%s3916_s2 + $0xb8] sm:$0xff]  ;;  %v2210_v62 = vpack.c.bf16 %v539_v55, %v537_v54  ;;  %v344_v3 = vmul.f32 %v2941_v57, %v2941_v57 }
  0x67   : > { %2201 = vmatprep.subr.bf16.mxu0 %v2200_v38  ;;  %v343_v63 = vmul.f32 %v2938_v56, %v2938_v56  ;;  %v541_v4 = vld [vmem:[%s3916_s2 + $0xa0] sm:$0xff]  ;;  %v543_v6 = vld [vmem:[%s3916_s2 + $0xb0] sm:$0xff]  ;;  %v2964_v10 = vld [vmem:[%s2797_s7 + $0x88] sm:$0xff]  ;;  %v2212_v11 = vpack.c.bf16 %v544_v60, %v542_v59 }
  0x68   : > { %v2961_v7 = vld [vmem:[%s2797_s7 + $0x80] sm:$0xff]  ;;  %v546_v15 = vld [vmem:[%s3916_s2 + $0xc8] sm:$0xff]  ;;  %v548_v16 = vld [vmem:[%s3916_s2 + $0xd8] sm:$0xff]  ;;  %v2214_v17 = vpack.c.bf16 %v543_v6, %v541_v4 }
  0x69   : > { %373 = vadd.xlane.f32.xlu0 %v335_v18  ;;  %375 = vadd.xlane.f32.xlu1 %v336_v19  ;;  %v345_v18 = vmul.f32 %v2961_v7, %v2961_v7  ;;  %v346_v19 = vmul.f32 %v2964_v10, %v2964_v10  ;;  %v545_v20 = vld [vmem:[%s3916_s2 + $0xc0] sm:$0xff]  ;;  %v547_v21 = vld [vmem:[%s3916_s2 + $0xd0] sm:$0xff]  ;;  %v2986_v23 = vld [vmem:[%s2797_s7 + $0x98] sm:$0xff]  ;;  %v2216_v25 = vpack.c.bf16 %v548_v16, %v546_v15 }
  0x6a   : > { %2203 = vmatpush1.bf16.msra.mxu0 %v2202_v41  ;;  %v2983_v22 = vld [vmem:[%s2797_s7 + $0x90] sm:$0xff]  ;;  %v550_v26 = vld [vmem:[%s3916_s2 + $0xe8] sm:$0xff]  ;;  %v552_v27 = vld [vmem:[%s3916_s2 + $0xf8] sm:$0xff]  ;;  %v2218_v28 = vpack.c.bf16 %v547_v21, %v545_v20  ;;  %v348_v30 = vmul.f32 %v2986_v23, %v2986_v23 }
  0x6b   : > { %2205 = vmatprep.subr.bf16.mxu0 %v2204_v48  ;;  %v347_v29 = vmul.f32 %v2983_v22, %v2983_v22  ;;  %v549_v31 = vld [vmem:[%s3916_s2 + $0xe0] sm:$0xff]  ;;  %v3008_v34 = vld [vmem:[%s2797_s7 + $0xa8] sm:$0xff]  ;;  %v2220_v35 = vpack.c.bf16 %v552_v27, %v550_v26  ;;  %v3015_v41 = vld [vmem:[%s2797_s7 + $0xb0] sm:$0xff] }
  0x6c   : > { %v350_v40 = vmul.f32 %v3008_v34, %v3008_v34  ;;  %v3025_v45 = vld [vmem:[%s2797_s7 + $0xc0] sm:$0xff]  ;;  %v3028_v48 = vld [vmem:[%s2797_s7 + $0xc8] sm:$0xff] }
  0x6d   : > { %377 = vadd.xlane.f32.xlu0 %v337_v32  ;;  %379 = vadd.xlane.f32.xlu1 %v338_v33  ;;  %v551_v32 = vld [vmem:[%s3916_s2 + $0xf0] sm:$0xff]  ;;  %v3005_v33 = vld [vmem:[%s2797_s7 + $0xa0] sm:$0xff]  ;;  %v353_v49 = vmul.f32 %v3025_v45, %v3025_v45  ;;  %v354_v50 = vmul.f32 %v3028_v48, %v3028_v48 }
  0x6e   : > { %2207 = vmatpush1.bf16.msra.mxu0 %v2206_v51  ;;  %v2222_v38 = vpack.c.bf16 %v551_v32, %v549_v31  ;;  %v349_v39 = vmul.f32 %v3005_v33, %v3005_v33  ;;  %v3035_v51 = vld [vmem:[%s2797_s7 + $0xd0] sm:$0xff]  ;;  %v3045_v55 = vld [vmem:[%s2797_s7 + $0xe0] sm:$0xff] }
  0x6f   : > { %2209 = vmatprep.subr.bf16.mxu0 %v2208_v58  ;;  %v3048_v58 = vld [vmem:[%s2797_s7 + $0xe8] sm:$0xff]  ;;  %v357_v59 = vmul.f32 %v3045_v55, %v3045_v55 }
  0x70   : > { %v358_v60 = vmul.f32 %v3048_v58, %v3048_v58 }
  0x71   : > { %381 = vadd.xlane.f32.xlu0 %v339_v42  ;;  %383 = vadd.xlane.f32.xlu1 %v340_v43  ;;  %v3018_v42 = vld [vmem:[%s2797_s7 + $0xb8] sm:$0xff]  ;;  %v351_v43 = vmul.f32 %v3015_v41, %v3015_v41 }
  0x72   : > { %2211 = vmatpush1.bf16.msra.mxu0 %v2210_v62  ;;  %v352_v44 = vmul.f32 %v3018_v42, %v3018_v42  ;;  %v3055_v62 = vld [vmem:[%s2797_s7 + $0xf0] sm:$0xff] }
  0x73   : > { %2213 = vmatprep.subr.bf16.mxu0 %v2212_v11 }
  0x75   : > { %385 = vadd.xlane.f32.xlu0 %v341_v52  ;;  %387 = vadd.xlane.f32.xlu1 %v342_v53  ;;  %v3038_v52 = vld [vmem:[%s2797_s7 + $0xd8] sm:$0xff]  ;;  %v355_v53 = vmul.f32 %v3035_v51, %v3035_v51 }
  0x76   : > { %2215 = vmatpush1.bf16.msra.mxu0 %v2214_v17  ;;  %v356_v54 = vmul.f32 %v3038_v52, %v3038_v52 }
  0x77   : > { %2217 = vmatprep.subr.bf16.mxu0 %v2216_v25 }
  0x79   : > { %389 = vadd.xlane.f32.xlu0 %v343_v63  ;;  %391 = vadd.xlane.f32.xlu1 %v344_v3  ;;  %v359_v63 = vmul.f32 %v3055_v62, %v3055_v62  ;;  %v3060_v3 = vld [vmem:[%s2797_s7 + $0xf8] sm:$0xff]  ;;  %s2045_s7 = sshll.u32 %s2791_s23, 9 }
  0x7a   : > { %2219 = vmatpush1.bf16.msra.mxu0 %v2218_v28  ;;  %v360_v4 = vmul.f32 %v3060_v3, %v3060_v3  ;;  %s3131_s24 = scalar_lea.vmem [#allocation7], %s2045_s7  ;;  %s2610_s7 = smov [#allocation7]  }
  0x7b   : > { %2221 = vmatprep.subr.bf16.mxu0 %v2220_v35  ;;  %s1892_s15 = sshll.u32 %s3131_s24, 4  ;;  %s2503_s12 = sshll.u32 %s2610_s7, 4  ;;  %s3818_s15 = int_to_ptr.vmem [resolvable:$true] %s1892_s15  ;;  %s2504_s12 = int_to_ptr.vmem [resolvable:$false] %s2503_s12 }
  0x7c   : > { %s2499_s10 = scalar_lea.vmem %s3818_s15, 8192  ;;  %p2506_p13 = scmp.lt.s32.totalorder %s3818_s15, %s2504_s12 }
  0x7d   : > { %393 = vadd.xlane.f32.xlu0 %v345_v18  ;;  %395 = vadd.xlane.f32.xlu1 %v346_v19  ;;  %p2500_p6 = scmp.ne.s32.totalorder %s3818_s15, %s2499_s10 }
  0x7e   : > { %2223 = vmatpush1.bf16.msra.mxu0 %v2222_v38 }
  0x7f   : > { %p2501_p8 = pnand %p2500_p6, %p2740_p12 }
  0x81   : > { %397 = vadd.xlane.f32.xlu0 %v347_v29  ;;  %399 = vadd.xlane.f32.xlu1 %v348_v30  ;;  %p2502_p10 = pneg %p2501_p8 }
  0x85   : > { %401 = vadd.xlane.f32.xlu0 %v349_v39  ;;  %403 = vadd.xlane.f32.xlu1 %v350_v40 }
  0x89   : > { %405 = vadd.xlane.f32.xlu0 %v351_v43  ;;  %407 = vadd.xlane.f32.xlu1 %v352_v44 }
  0x8d   : > { %409 = vadd.xlane.f32.xlu0 %v353_v49  ;;  %411 = vadd.xlane.f32.xlu1 %v354_v50 }
  0x91   : > { %413 = vadd.xlane.f32.xlu0 %v355_v53  ;;  %415 = vadd.xlane.f32.xlu1 %v356_v54 }
  0x95   : > { %417 = vadd.xlane.f32.xlu0 %v357_v59  ;;  %419 = vadd.xlane.f32.xlu1 %v358_v60 }
  0x99   : > { %421 = vadd.xlane.f32.xlu0 %v359_v63  ;;  %423 = vadd.xlane.f32.xlu1 %v360_v4 }
  0xea   : > { %v362_v6 = vpop.xlane.xlu0 %361  ;;  %v366_v11 = vpop.xlane.xlu1 %365 }
  0xeb   : > { %v425_v15 = vmax.f32 %v362_v6, 1e-24  ;;  %v427_v16 = vmax.f32 %v366_v11, 1e-24 }
  0xed   : > { %2375 = vrsqrt.f32 %v425_v15 }
  0xee   : > { %v364_v17 = vpop.xlane.xlu0 %363  ;;  %v368_v18 = vpop.xlane.xlu1 %367  ;;  %2377 = vrsqrt.f32 %v427_v16 }
  0xef   : > { %v426_v19 = vmax.f32 %v364_v17, 1e-24  ;;  %v428_v20 = vmax.f32 %v368_v18, 1e-24 }
  0xf1   : > { %2379 = vrsqrt.f32 %v426_v19 }
  0xf2   : > { %v370_v21 = vpop.xlane.xlu0 %369  ;;  %2381 = vrsqrt.f32 %v428_v20  ;;  %v372_v26 = vpop.xlane.xlu1 %371 }
  0xf3   : > { %v429_v25 = vmax.f32 %v370_v21, 1e-24  ;;  %v430_v29 = vmax.f32 %v372_v26, 1e-24 }
  0xf5   : > { %2383 = vrsqrt.f32 %v429_v25 }
  0xf6   : > { %v374_v31 = vpop.xlane.xlu0 %373  ;;  %2385 = vrsqrt.f32 %v430_v29  ;;  %v376_v40 = vpop.xlane.xlu1 %375 }
  0xf7   : > { %v2376_v27 = vpop.eup %2375  ;;  %v431_v38 = vmax.f32 %v374_v31, 1e-24 }
  0xf8   : > { %v489_v28 = vmul.f32 %v2376_v27, %v2808_v0  ;;  %v2378_v30 = vpop.eup %2377  ;;  %v432_v0 = vmax.f32 %v376_v40, 1e-24 }
  0xf9   : > { %v491_v39 = vmul.f32 %v2378_v30, %v2814_v2  ;;  %2387 = vrsqrt.f32 %v431_v38 }
  0xfa   : > { %618 = vmatmul.mubr.f32.vlgmr.msra.gmra.mrb[0].mxu0 %v489_v28  ;;  %v378_v49 = vpop.xlane.xlu0 %377  ;;  %2389 = vrsqrt.f32 %v432_v0  ;;  %v380_v54 = vpop.xlane.xlu1 %379 }
  0xfb   : > { %v2380_v32 = vpop.eup %2379  ;;  %623 = vmatprep.mubr.f32.mxu0 %v2607_v61  ;;  %v434_v59 = vmax.f32 %v380_v54, 1e-24 }
  0xfc   : > { %v490_v35 = vmul.f32 %v2380_v32, %v2811_v1  ;;  %v2382_v43 = vpop.eup %2381  ;;  %v433_v1 = vmax.f32 %v378_v49, 1e-24 }
  0xfd   : > { %v492_v44 = vmul.f32 %v2382_v43, %v2821_v5 }
  0xfe   : > { %624 = vmatmul.mubr.f32.gmra.mrb[2].mxu0 %v490_v35  ;;  %2391 = vrsqrt.f32 %v433_v1  ;;  %v382_v63 = vpop.xlane.xlu0 %381  ;;  %v384_v11 = vpop.xlane.xlu1 %383 }
  0xff   : > { %629 = vmatprep.mubr.f32.mxu0 %v2607_v61  ;;  %v2384_v50 = vpop.eup %2383  ;;  %2393 = vrsqrt.f32 %v434_v59  ;;  %v435_v4 = vmax.f32 %v382_v63, 1e-24  ;;  %v436_v15 = vmax.f32 %v384_v11, 1e-24 }
 0x100   : > { %v493_v53 = vmul.f32 %v2384_v50, %v2828_v8  ;;  %v2386_v2 = vpop.eup %2385 }
 0x101   : > { %v494_v60 = vmul.f32 %v2386_v2, %v2831_v9  ;;  %2395 = vrsqrt.f32 %v435_v4 }
 0x102   : > { %630 = vmatmul.mubr.f32.gmra.mrb[4].mxu0 %v491_v39  ;;  %v386_v17 = vpop.xlane.xlu0 %385  ;;  %2397 = vrsqrt.f32 %v436_v15  ;;  %v388_v20 = vpop.xlane.xlu1 %387 }
 0x103   : > { %635 = vmatprep.mubr.f32.mxu0 %v2607_v61  ;;  %v2388_v5 = vpop.eup %2387  ;;  %v437_v18 = vmax.f32 %v386_v17, 1e-24  ;;  %v438_v21 = vmax.f32 %v388_v20, 1e-24 }
 0x104   : > { %v495_v6 = vmul.f32 %v2388_v5, %v2838_v12  ;;  %v2390_v8 = vpop.eup %2389 }
 0x105   : > { %v496_v16 = vmul.f32 %v2390_v8, %v2841_v13  ;;  %2399 = vrsqrt.f32 %v437_v18 }
 0x106   : > { %636 = vmatmul.mubr.f32.gmra.mrb[6].mxu0 %v492_v44  ;;  %v390_v26 = vpop.xlane.xlu0 %389  ;;  %2401 = vrsqrt.f32 %v438_v21  ;;  %v392_v29 = vpop.xlane.xlu1 %391 }
 0x107   : > { %641 = vmatprep.mubr.f32.mxu0 %v2607_v61  ;;  %v439_v27 = vmax.f32 %v390_v26, 1e-24  ;;  %v440_v30 = vmax.f32 %v392_v29, 1e-24 }
 0x108   : > { %v2392_v9 = vpop.eup %2391 }
 0x109   : > { %v497_v19 = vmul.f32 %v2392_v9, %v2844_v14  ;;  %v2394_v12 = vpop.eup %2393  ;;  %2403 = vrsqrt.f32 %v439_v27 }
 0x10a   : > { %642 = vmatmul.mubr.f32.gmra.mrb[8].mxu0 %v493_v53  ;;  %v498_v25 = vmul.f32 %v2394_v12, %v2869_v24  ;;  %v394_v32 = vpop.xlane.xlu0 %393  ;;  %2405 = vrsqrt.f32 %v440_v30  ;;  %v396_v39 = vpop.xlane.xlu1 %395 }
 0x10b   : > { %647 = vmatprep.mubr.f32.mxu0 %v2607_v61  ;;  %v2396_v13 = vpop.eup %2395  ;;  %v441_v35 = vmax.f32 %v394_v32, 1e-24  ;;  %v442_v40 = vmax.f32 %v396_v39, 1e-24 }
 0x10c   : > { %v499_v28 = vmul.f32 %v2396_v13, %v2894_v36  ;;  %v2398_v14 = vpop.eup %2397 }
 0x10d   : > { %v500_v31 = vmul.f32 %v2398_v14, %v2897_v37  ;;  %2407 = vrsqrt.f32 %v441_v35 }
 0x10e   : > { %648 = vmatmul.mubr.f32.gmra.mrb[10].mxu0 %v494_v60  ;;  %v398_v0 = vpop.xlane.xlu0 %397  ;;  %2409 = vrsqrt.f32 %v442_v40  ;;  %v400_v50 = vpop.xlane.xlu1 %399 }
 0x10f   : > { %653 = vmatprep.mubr.f32.mxu0 %v2607_v61  ;;  %v2400_v24 = vpop.eup %2399  ;;  %v443_v44 = vmax.f32 %v398_v0, 1e-24  ;;  %v444_v1 = vmax.f32 %v400_v50, 1e-24 }
 0x110   : > { %v501_v38 = vmul.f32 %v2400_v24, %v2916_v46  ;;  %v2402_v36 = vpop.eup %2401 }
 0x111   : > { %v502_v43 = vmul.f32 %v2402_v36, %v2919_v47  ;;  %2411 = vrsqrt.f32 %v443_v44 }
 0x112   : > { %654 = vmatmul.mubr.f32.gmra.mrb[12].mxu0 %v495_v6  ;;  %v402_v54 = vpop.xlane.xlu0 %401  ;;  %2413 = vrsqrt.f32 %v444_v1  ;;  %v404_v60 = vpop.xlane.xlu1 %403 }
 0x113   : > { %659 = vmatprep.mubr.f32.mxu0 %v2607_v61  ;;  %v2404_v37 = vpop.eup %2403  ;;  %v445_v2 = vmax.f32 %v402_v54, 1e-24  ;;  %v446_v63 = vmax.f32 %v404_v60, 1e-24  ;;  %v882_v54 = vld [vmem:[%s3158_s14 + $0x40] sm:$0xff] }
 0x114   : > { %v503_v49 = vmul.f32 %v2404_v37, %v2938_v56  ;;  %v2406_v46 = vpop.eup %2405 }
 0x115   : > { %v504_v53 = vmul.f32 %v2406_v46, %v2941_v57  ;;  %2415 = vrsqrt.f32 %v445_v2 }
 0x116   : > { %660 = vmatmul.mubr.f32.gmra.mrb[14].mxu0 %v496_v16  ;;  %v406_v4 = vpop.xlane.xlu0 %405  ;;  %2417 = vrsqrt.f32 %v446_v63  ;;  %v408_v8 = vpop.xlane.xlu1 %407  ;;  %v884_v63 = vld [vmem:[%s3158_s14 + $0x50] sm:$0xff] }
 0x117   : > { %665 = vmatprep.mubr.f32.mxu0 %v2607_v61  ;;  %v2408_v47 = vpop.eup %2407  ;;  %v447_v6 = vmax.f32 %v406_v4, 1e-24  ;;  %v448_v15 = vmax.f32 %v408_v8, 1e-24  ;;  %v885_v4 = vld [vmem:[%s3158_s14 + $0x58] sm:$0xff] }
 0x118   : > { %v505_v59 = vmul.f32 %v2408_v47, %v2961_v7  ;;  %v2410_v56 = vpop.eup %2409  ;;  %v883_v47 = vld [vmem:[%s3158_s14 + $0x48] sm:$0xff] }
 0x119   : > { %v506_v5 = vmul.f32 %v2410_v56, %v2964_v10  ;;  %2419 = vrsqrt.f32 %v447_v6 }
 0x11a   : > { %666 = vmatmul.mubr.f32.gmra.mrb[16].mxu0 %v497_v19  ;;  %v410_v17 = vpop.xlane.xlu0 %409  ;;  %2421 = vrsqrt.f32 %v448_v15  ;;  %v412_v19 = vpop.xlane.xlu1 %411 }
 0x11b   : > { %671 = vmatprep.mubr.f32.mxu0 %v2607_v61  ;;  %v2412_v57 = vpop.eup %2411  ;;  %v449_v9 = vmax.f32 %v410_v17, 1e-24  ;;  %v450_v20 = vmax.f32 %v412_v19, 1e-24 }
 0x11c   : > { %v507_v11 = vmul.f32 %v2412_v57, %v2983_v22  ;;  %v2414_v7 = vpop.eup %2413 }
 0x11d   : > { %v508_v16 = vmul.f32 %v2414_v7, %v2986_v23  ;;  %2423 = vrsqrt.f32 %v449_v9 }
 0x11e   : > { %672 = vmatmul.mubr.f32.gmra.mrb[18].mxu0 %v498_v25  ;;  %v414_v21 = vpop.xlane.xlu0 %413  ;;  %2425 = vrsqrt.f32 %v450_v20  ;;  %v416_v13 = vpop.xlane.xlu1 %415 }
 0x11f   : > { %677 = vmatprep.mubr.f32.mxu0 %v2607_v61  ;;  %v2416_v10 = vpop.eup %2415  ;;  %v451_v25 = vmax.f32 %v414_v21, 1e-24  ;;  %v452_v27 = vmax.f32 %v416_v13, 1e-24  ;;  %v888_v21 = vld [vmem:[%s3158_s14 + $0x70] sm:$0xff] }
 0x120   : > { %v509_v18 = vmul.f32 %v2416_v10, %v3005_v33  ;;  %v2418_v22 = vpop.eup %2417  ;;  %v887_v10 = vld [vmem:[%s3158_s14 + $0x68] sm:$0xff] }
 0x121   : > { %v510_v12 = vmul.f32 %v2418_v22, %v3008_v34  ;;  %2427 = vrsqrt.f32 %v451_v25  ;;  %v889_v25 = vld [vmem:[%s3158_s14 + $0x78] sm:$0xff] }
 0x122   : > { %678 = vmatmul.mubr.f32.gmra.mrb[20].mxu0 %v499_v28  ;;  %v418_v29 = vpop.xlane.xlu0 %417  ;;  %2429 = vrsqrt.f32 %v452_v27 }
 0x123   : > { %683 = vmatprep.mubr.f32.mxu0 %v2607_v61  ;;  %v2420_v23 = vpop.eup %2419  ;;  %v453_v14 = vmax.f32 %v418_v29, 1e-24 }
 0x124   : > { %v511_v26 = vmul.f32 %v2420_v23, %v3015_v41  ;;  %v2422_v33 = vpop.eup %2421 }
 0x125   : > { %v512_v28 = vmul.f32 %v2422_v33, %v3018_v42  ;;  %2431 = vrsqrt.f32 %v453_v14 }
 0x126   : > { %684 = vmatmul.mubr.f32.gmra.mrb[22].mxu0 %v500_v31  ;;  %v420_v31 = vpop.xlane.xlu1 %419  ;;  %v422_v35 = vpop.xlane.xlu0 %421 }
 0x127   : > { %689 = vmatprep.mubr.f32.mxu0 %v2607_v61  ;;  %v2424_v34 = vpop.eup %2423  ;;  %v454_v32 = vmax.f32 %v420_v31, 1e-24 }
 0x128   : > { %v513_v30 = vmul.f32 %v2424_v34, %v3025_v45  ;;  %v2426_v41 = vpop.eup %2425  ;;  %v890_v34 = vld [vmem:[%s3158_s14 + $0x80] sm:$0xff] }
 0x129   : > { %v514_v24 = vmul.f32 %v2426_v41, %v3028_v48  ;;  %2433 = vrsqrt.f32 %v454_v32 }
 0x12a   : > { %690 = vmatmul.mubr.f32.gmra.mrb[24].mxu0 %v501_v38  ;;  %v455_v38 = vmax.f32 %v422_v35, 1e-24  ;;  %v424_v36 = vpop.xlane.xlu1 %423 }
 0x12b   : > { %695 = vmatprep.mubr.f32.mxu0 %v2607_v61  ;;  %v2428_v42 = vpop.eup %2427  ;;  %v456_v40 = vmax.f32 %v424_v36, 1e-24  ;;  %v893_v36 = vld [vmem:[%s3158_s14 + $0x98] sm:$0xff] }
 0x12c   : > { %v515_v39 = vmul.f32 %v2428_v42, %v3035_v51  ;;  %v2430_v45 = vpop.eup %2429  ;;  %2435 = vrsqrt.f32 %v455_v38  ;;  %v892_v38 = vld [vmem:[%s3158_s14 + $0x90] sm:$0xff] }
 0x12d   : > { %2437 = vrsqrt.f32 %v456_v40 }
 0x12e   : > { %696 = vmatmul.mubr.f32.gmra.mrb[26].mxu0 %v502_v43  ;;  %v516_v43 = vmul.f32 %v2430_v45, %v3038_v52 }
 0x12f   : > { %701 = vmatprep.mubr.f32.mxu0 %v2607_v61  ;;  %v2432_v0 = vpop.eup %2431 }
 0x130   : > { %v517_v48 = vmul.f32 %v2432_v0, %v3045_v55 }
 0x132   : > { %702 = vmatmul.mubr.f32.gmra.mrb[28].mxu0 %v503_v49 }
 0x133   : > { %707 = vmatprep.mubr.f32.mxu0 %v2607_v61  ;;  %v2434_v37 = vpop.eup %2433 }
 0x134   : > { %v518_v51 = vmul.f32 %v2434_v37, %v3048_v58 }
 0x136   : > { %708 = vmatmul.mubr.f32.gmra.mrb[30].mxu0 %v504_v53  ;;  %v2436_v44 = vpop.eup %2435 }
 0x137   : > { %713 = vmatprep.mubr.f32.mxu0 %v2607_v61  ;;  %v519_v52 = vmul.f32 %v2436_v44, %v3055_v62  ;;  %v2438_v49 = vpop.eup %2437 }
 0x138   : > { %v520_v50 = vmul.f32 %v2438_v49, %v3060_v3 }
 0x13a   : > { %714 = vmatmul.mubr.f32.gmra.mrb[32].mxu0 %v505_v59 }
 0x13b   : > { %719 = vmatprep.mubr.f32.mxu0 %v2607_v61 }
 0x13e   : > { %720 = vmatmul.mubr.f32.gmra.mrb[34].mxu0 %v506_v5 }
 0x13f   : > { %725 = vmatprep.mubr.f32.mxu0 %v2607_v61 }
 0x142   : > { %726 = vmatmul.mubr.f32.gmra.mrb[36].mxu0 %v507_v11 }
 0x143   : > { %731 = vmatprep.mubr.f32.mxu0 %v2607_v61 }
 0x146   : > { %732 = vmatmul.mubr.f32.gmra.mrb[38].mxu0 %v508_v16  ;;  %v886_v16 = vld [vmem:[%s3158_s14 + $0x60] sm:$0xff] }
 0x147   : > { %737 = vmatprep.mubr.f32.mxu0 %v2607_v61 }
 0x14a   : > { %738 = vmatmul.mubr.f32.gmra.mrb[40].mxu0 %v509_v18 }
 0x14b   : > { %743 = vmatprep.mubr.f32.mxu0 %v2607_v61 }
 0x14e   : > { %744 = vmatmul.mubr.f32.gmra.mrb[42].mxu0 %v510_v12 }
 0x14f   : > { %749 = vmatprep.mubr.f32.mxu0 %v2607_v61 }
 0x152   : > { %750 = vmatmul.mubr.f32.gmra.mrb[44].mxu0 %v511_v26 }
 0x153   : > { %755 = vmatprep.mubr.f32.mxu0 %v2607_v61 }
 0x156   : > { %756 = vmatmul.mubr.f32.gmra.mrb[46].mxu0 %v512_v28 }
 0x157   : > { %761 = vmatprep.mubr.f32.mxu0 %v2607_v61 }
 0x15a   : > { %762 = vmatmul.mubr.f32.gmra.mrb[48].mxu0 %v513_v30  ;;  %v891_v30 = vld [vmem:[%s3158_s14 + $0x88] sm:$0xff] }
 0x15b   : > { %767 = vmatprep.mubr.f32.mxu0 %v2607_v61 }
 0x15e   : > { %768 = vmatmul.mubr.f32.gmra.mrb[50].mxu0 %v514_v24 }
 0x15f   : > { %773 = vmatprep.mubr.f32.mxu0 %v2607_v61 }
 0x162   : > { %774 = vmatmul.mubr.f32.gmra.mrb[52].mxu0 %v515_v39 }
 0x163   : > { %779 = vmatprep.mubr.f32.mxu0 %v2607_v61 }
 0x166   : > { %780 = vmatmul.mubr.f32.gmra.mrb[54].mxu0 %v516_v43 }
 0x167   : > { %785 = vmatprep.mubr.f32.mxu0 %v2607_v61 }
 0x16a   : > { %786 = vmatmul.mubr.f32.gmra.mrb[56].mxu0 %v517_v48 }
 0x16b   : > { %791 = vmatprep.mubr.f32.mxu0 %v2607_v61 }
 0x16e   : > { %792 = vmatmul.mubr.f32.gmra.mrb[58].mxu0 %v518_v51  ;;  %v894_v51 = vld [vmem:[%s3158_s14 + $0xa0] sm:$0xff] }
 0x16f   : > { %797 = vmatprep.mubr.f32.mxu0 %v2607_v61 }
 0x172   : > { %798 = vmatmul.mubr.f32.gmra.mrb[60].mxu0 %v519_v52  ;;  %v895_v52 = vld [vmem:[%s3158_s14 + $0xa8] sm:$0xff] }
 0x173   : > { %803 = vmatprep.mubr.f32.mxu0 %v2607_v61 }
 0x176   : > { %804 = vmatmul.mubr.f32.gmra.mrb[62].mxu0 %v520_v50 }
 0x1cd   : > { %v3129_v55 = vpop.f32.mrb[0].mxu0 }
 0x1ce   : > { %810 = vst [vmem:[%s3131_s24] sm:$0xff] %v3129_v55  ;;  %v3135_v58 = vpop.f32.mrb[1].mxu0 }
 0x1cf   : > { %811 = vst [vmem:[%s3131_s24 + $0x8] sm:$0xff] %v3135_v58 }
 0x1d1   : > { %v3139_v61 = vpop.f32.mrb[2].mxu0 }
 0x1d2   : > { %812 = vst [vmem:[%s3131_s24 + $0x10] sm:$0xff] %v3139_v61  ;;  %v3143_v62 = vpop.f32.mrb[3].mxu0 }
 0x1d3   : > { %813 = vst [vmem:[%s3131_s24 + $0x18] sm:$0xff] %v3143_v62 }
 0x1d5   : > { %v3147_v3 = vpop.f32.mrb[4].mxu0 }
 0x1d6   : > { %814 = vst [vmem:[%s3131_s24 + $0x20] sm:$0xff] %v3147_v3  ;;  %v3151_v46 = vpop.f32.mrb[5].mxu0 }
 0x1d7   : > { %815 = vst [vmem:[%s3131_s24 + $0x28] sm:$0xff] %v3151_v46 }
 0x1d9   : > { %v637_v1 = vpop.f32.mrb[6].mxu0 }
 0x1da   : > { %816 = vst [vmem:[%s3131_s24 + $0x30] sm:$0xff] %v637_v1  ;;  %v639_v53 = vpop.f32.mrb[7].mxu0 }
 0x1db   : > { %817 = vst [vmem:[%s3131_s24 + $0x38] sm:$0xff] %v639_v53 }
 0x1dd   : > { %v643_v2 = vpop.f32.mrb[8].mxu0 }
 0x1de   : > { %818 = vst [vmem:[%s3131_s24 + $0x40] sm:$0xff] %v643_v2  ;;  %v946_v59 = vadd.f32 %v882_v54, %v643_v2  ;;  %v645_v60 = vpop.f32.mrb[9].mxu0  ;;  %v896_v2 = vld [vmem:[%s3158_s14 + $0xb0] sm:$0xff] }
 0x1df   : > { %819 = vst [vmem:[%s3131_s24 + $0x48] sm:$0xff] %v645_v60  ;;  %v947_v56 = vadd.f32 %v883_v47, %v645_v60  ;;  %v897_v60 = vld [vmem:[%s3158_s14 + $0xb8] sm:$0xff] }
 0x1e0   : > { %v3167_v5 = vmul.f32 33.333332, %v946_v59 }
 0x1e1   : > { %v3170_v57 = vmul.f32 33.333332, %v947_v56  ;;  %v649_v6 = vpop.f32.mrb[10].mxu0 }
 0x1e2   : > { %820 = vst [vmem:[%s3131_s24 + $0x50] sm:$0xff] %v649_v6  ;;  %v948_v11 = vadd.f32 %v884_v63, %v649_v6  ;;  %v651_v8 = vpop.f32.mrb[11].mxu0 }
 0x1e3   : > { %821 = vst [vmem:[%s3131_s24 + $0x58] sm:$0xff] %v651_v8  ;;  %v949_v7 = vadd.f32 %v885_v4, %v651_v8  ;;  %v1078_v15 = vmax.f32 %v3167_v5, %v3170_v57 }
 0x1e4   : > { %v3177_v17 = vmul.f32 33.333332, %v948_v11 }
 0x1e5   : > { %v3180_v9 = vmul.f32 33.333332, %v949_v7  ;;  %1079 = vmax.xlane.f32.xlu0 %v1078_v15  ;;  %v655_v18 = vpop.f32.mrb[12].mxu0  ;;  %v898_v7 = vld [vmem:[%s3158_s14 + $0xc0] sm:$0xff] }
 0x1e6   : > { %822 = vst [vmem:[%s3131_s24 + $0x60] sm:$0xff] %v655_v18  ;;  %v950_v19 = vadd.f32 %v886_v16, %v655_v18  ;;  %v657_v22 = vpop.f32.mrb[13].mxu0  ;;  %v899_v16 = vld [vmem:[%s3158_s14 + $0xc8] sm:$0xff] }
 0x1e7   : > { %823 = vst [vmem:[%s3131_s24 + $0x68] sm:$0xff] %v657_v22  ;;  %v951_v20 = vadd.f32 %v887_v10, %v657_v22  ;;  %v1081_v12 = vmax.f32 %v3177_v17, %v3180_v9 }
 0x1e8   : > { %v3187_v23 = vmul.f32 33.333332, %v950_v19 }
 0x1e9   : > { %v3190_v26 = vmul.f32 33.333332, %v951_v20  ;;  %1082 = vmax.xlane.f32.xlu1 %v1081_v12  ;;  %v661_v13 = vpop.f32.mrb[14].mxu0 }
 0x1ea   : > { %824 = vst [vmem:[%s3131_s24 + $0x70] sm:$0xff] %v661_v13  ;;  %v952_v33 = vadd.f32 %v888_v21, %v661_v13  ;;  %v663_v27 = vpop.f32.mrb[15].mxu0  ;;  %v900_v21 = vld [vmem:[%s3158_s14 + $0xd0] sm:$0xff]  ;;  %v901_v13 = vld [vmem:[%s3158_s14 + $0xd8] sm:$0xff] }
 0x1eb   : > { %825 = vst [vmem:[%s3131_s24 + $0x78] sm:$0xff] %v663_v27  ;;  %v953_v28 = vadd.f32 %v889_v25, %v663_v27  ;;  %v1084_v29 = vmax.f32 %v3187_v23, %v3190_v26 }
 0x1ec   : > { %v3197_v14 = vmul.f32 33.333332, %v952_v33 }
 0x1ed   : > { %v3200_v31 = vmul.f32 33.333332, %v953_v28  ;;  %1085 = vmax.xlane.f32.xlu0 %v1084_v29  ;;  %v667_v41 = vpop.f32.mrb[16].mxu0 }
 0x1ee   : > { %826 = vst [vmem:[%s3131_s24 + $0x80] sm:$0xff] %v667_v41  ;;  %v954_v32 = vadd.f32 %v890_v34, %v667_v41  ;;  %v669_v24 = vpop.f32.mrb[17].mxu0  ;;  %v902_v41 = vld [vmem:[%s3158_s14 + $0xe0] sm:$0xff] }
 0x1ef   : > { %827 = vst [vmem:[%s3131_s24 + $0x88] sm:$0xff] %v669_v24  ;;  %v955_v35 = vadd.f32 %v891_v30, %v669_v24  ;;  %v1087_v42 = vmax.f32 %v3197_v14, %v3200_v31  ;;  %v903_v24 = vld [vmem:[%s3158_s14 + $0xe8] sm:$0xff] }
 0x1f0   : > { %v3207_v39 = vmul.f32 33.333332, %v954_v32 }
 0x1f1   : > { %v3210_v45 = vmul.f32 33.333332, %v955_v35  ;;  %1088 = vmax.xlane.f32.xlu1 %v1087_v42  ;;  %v673_v40 = vpop.f32.mrb[18].mxu0 }
 0x1f2   : > { %828 = vst [vmem:[%s3131_s24 + $0x90] sm:$0xff] %v673_v40  ;;  %v956_v43 = vadd.f32 %v892_v38, %v673_v40  ;;  %v675_v0 = vpop.f32.mrb[19].mxu0 }
 0x1f3   : > { %829 = vst [vmem:[%s3131_s24 + $0x98] sm:$0xff] %v675_v0  ;;  %v957_v48 = vadd.f32 %v893_v36, %v675_v0  ;;  %v1090_v37 = vmax.f32 %v3207_v39, %v3210_v45  ;;  %v904_v0 = vld [vmem:[%s3158_s14 + $0xf0] sm:$0xff] }
 0x1f4   : > { %v3217_v44 = vmul.f32 33.333332, %v956_v43 }
 0x1f5   : > { %v3220_v49 = vmul.f32 33.333332, %v957_v48  ;;  %1091 = vmax.xlane.f32.xlu0 %v1090_v37  ;;  %v679_v50 = vpop.f32.mrb[20].mxu0  ;;  %v905_v37 = vld [vmem:[%s3158_s14 + $0xf8] sm:$0xff] }
 0x1f6   : > { %830 = vst [vmem:[%s3131_s24 + $0xa0] sm:$0xff] %v679_v50  ;;  %v958_v1 = vadd.f32 %v894_v51, %v679_v50  ;;  %v681_v53 = vpop.f32.mrb[21].mxu0 }
 0x1f7   : > { %831 = vst [vmem:[%s3131_s24 + $0xa8] sm:$0xff] %v681_v53  ;;  %v959_v54 = vadd.f32 %v895_v52, %v681_v53  ;;  %v1093_v47 = vmax.f32 %v3217_v44, %v3220_v49 }
 0x1f8   : > { %v3227_v59 = vmul.f32 33.333332, %v958_v1 }
 0x1f9   : > { %v3230_v56 = vmul.f32 33.333332, %v959_v54  ;;  %1094 = vmax.xlane.f32.xlu1 %v1093_v47  ;;  %v685_v63 = vpop.f32.mrb[22].mxu0  ;;  %v906_v47 = vld [vmem:[%s3158_s14 + $0x100] sm:$0xff] }
 0x1fa   : > { %832 = vst [vmem:[%s3131_s24 + $0xb0] sm:$0xff] %v685_v63  ;;  %v960_v4 = vadd.f32 %v896_v2, %v685_v63  ;;  %v687_v6 = vpop.f32.mrb[23].mxu0 }
 0x1fb   : > { %833 = vst [vmem:[%s3131_s24 + $0xb8] sm:$0xff] %v687_v6  ;;  %v961_v11 = vadd.f32 %v897_v60, %v687_v6  ;;  %v1096_v8 = vmax.f32 %v3227_v59, %v3230_v56  ;;  %v907_v60 = vld [vmem:[%s3158_s14 + $0x108] sm:$0xff] }
 0x1fc   : > { %v3237_v15 = vmul.f32 33.333332, %v960_v4 }
 0x1fd   : > { %v3240_v10 = vmul.f32 33.333332, %v961_v11  ;;  %1097 = vmax.xlane.f32.xlu0 %v1096_v8  ;;  %v691_v18 = vpop.f32.mrb[24].mxu0 }
 0x1fe   : > { %834 = vst [vmem:[%s3131_s24 + $0xc0] sm:$0xff] %v691_v18  ;;  %v962_v19 = vadd.f32 %v898_v7, %v691_v18  ;;  %v693_v22 = vpop.f32.mrb[25].mxu0 }
 0x1ff   : > { %835 = vst [vmem:[%s3131_s24 + $0xc8] sm:$0xff] %v693_v22  ;;  %v963_v20 = vadd.f32 %v899_v16, %v693_v22  ;;  %v1099_v12 = vmax.f32 %v3237_v15, %v3240_v10  ;;  %v908_v16 = vld [vmem:[%s3158_s14 + $0x110] sm:$0xff] }
 0x200   : > { %v3247_v25 = vmul.f32 33.333332, %v962_v19  ;;  %v909_v19 = vld [vmem:[%s3158_s14 + $0x118] sm:$0xff] }
 0x201   : > { %v3250_v33 = vmul.f32 33.333332, %v963_v20  ;;  %1100 = vmax.xlane.f32.xlu1 %v1099_v12  ;;  %v697_v27 = vpop.f32.mrb[26].mxu0 }
 0x202   : > { %836 = vst [vmem:[%s3131_s24 + $0xd0] sm:$0xff] %v697_v27  ;;  %v964_v28 = vadd.f32 %v900_v21, %v697_v27  ;;  %v699_v29 = vpop.f32.mrb[27].mxu0 }
 0x203   : > { %837 = vst [vmem:[%s3131_s24 + $0xd8] sm:$0xff] %v699_v29  ;;  %v965_v34 = vadd.f32 %v901_v13, %v699_v29  ;;  %v1102_v30 = vmax.f32 %v3247_v25, %v3250_v33  ;;  %v876_v29 = vld [vmem:[%s3158_s14 + $0x10] sm:$0xff] }
 0x204   : > { %v3257_v32 = vmul.f32 33.333332, %v964_v28  ;;  %v910_v28 = vld [vmem:[%s3158_s14 + $0x120] sm:$0xff] }
 0x205   : > { %v3260_v35 = vmul.f32 33.333332, %v965_v34  ;;  %1103 = vmax.xlane.f32.xlu0 %v1102_v30  ;;  %v703_v42 = vpop.f32.mrb[28].mxu0  ;;  %v877_v34 = vld [vmem:[%s3158_s14 + $0x18] sm:$0xff] }
 0x206   : > { %838 = vst [vmem:[%s3131_s24 + $0xe0] sm:$0xff] %v703_v42  ;;  %v966_v38 = vadd.f32 %v902_v41, %v703_v42  ;;  %v705_v36 = vpop.f32.mrb[29].mxu0  ;;  %v911_v41 = vld [vmem:[%s3158_s14 + $0x128] sm:$0xff] }
 0x207   : > { %839 = vst [vmem:[%s3131_s24 + $0xe8] sm:$0xff] %v705_v36  ;;  %v967_v40 = vadd.f32 %v903_v24, %v705_v36  ;;  %v1105_v43 = vmax.f32 %v3257_v32, %v3260_v35 }
 0x208   : > { %v3267_v48 = vmul.f32 33.333332, %v966_v38 }
 0x209   : > { %v3270_v51 = vmul.f32 33.333332, %v967_v40  ;;  %1106 = vmax.xlane.f32.xlu1 %v1105_v43  ;;  %v709_v52 = vpop.f32.mrb[30].mxu0  ;;  %v874_v40 = vld [vmem:[%s3158_s14] sm:$0xff]  ;;  %v875_v43 = vld [vmem:[%s3158_s14 + $0x8] sm:$0xff] }
 0x20a   : > { %840 = vst [vmem:[%s3131_s24 + $0xf0] sm:$0xff] %v709_v52  ;;  %v968_v50 = vadd.f32 %v904_v0, %v709_v52  ;;  %v711_v1 = vpop.f32.mrb[31].mxu0  ;;  %v940_v0 = vadd.f32 %v876_v29, %v3139_v61  ;;  %v938_v61 = vadd.f32 %v874_v40, %v3129_v55  ;;  %v915_v55 = vld [vmem:[%s3158_s14 + $0x148] sm:$0xff] }
 0x20b   : > { %841 = vst [vmem:[%s3131_s24 + $0xf8] sm:$0xff] %v711_v1  ;;  %v969_v53 = vadd.f32 %v905_v37, %v711_v1  ;;  %v1108_v54 = vmax.f32 %v3267_v48, %v3270_v51  ;;  %v941_v37 = vadd.f32 %v877_v34, %v3143_v62  ;;  %v912_v1 = vld [vmem:[%s3158_s14 + $0x130] sm:$0xff]  ;;  %v939_v62 = vadd.f32 %v875_v43, %v3135_v58 }
 0x20c   : > { %v3277_v2 = vmul.f32 33.333332, %v968_v50 }
 0x20d   : > { %v3280_v63 = vmul.f32 33.333332, %v969_v53  ;;  %1109 = vmax.xlane.f32.xlu0 %v1108_v54  ;;  %v715_v4 = vpop.f32.mrb[32].mxu0  ;;  %v913_v54 = vld [vmem:[%s3158_s14 + $0x138] sm:$0xff] }
 0x20e   : > { %842 = vst [vmem:[%s3131_s24 + $0x100] sm:$0xff] %v715_v4  ;;  %v970_v6 = vadd.f32 %v906_v47, %v715_v4  ;;  %v717_v11 = vpop.f32.mrb[33].mxu0 }
 0x20f   : > { %843 = vst [vmem:[%s3131_s24 + $0x108] sm:$0xff] %v717_v11  ;;  %v971_v8 = vadd.f32 %v907_v60, %v717_v11  ;;  %v1111_v7 = vmax.f32 %v3277_v2, %v3280_v63  ;;  %v3321_v11 = vmul.f32 33.333332, %v940_v0 }
 0x210   : > { %v3287_v18 = vmul.f32 33.333332, %v970_v6 }
 0x211   : > { %v3290_v22 = vmul.f32 33.333332, %v971_v8  ;;  %1112 = vmax.xlane.f32.xlu1 %v1111_v7  ;;  %v721_v20 = vpop.f32.mrb[34].mxu0  ;;  %3946 = vst [vmem:[#allocation14_spill] sm:$0xff] %v3321_v11  ;;  %v3323_v8 = vmul.f32 33.333332, %v941_v37 }
 0x212   : > { %844 = vst [vmem:[%s3131_s24 + $0x110] sm:$0xff] %v721_v20  ;;  %v972_v12 = vadd.f32 %v908_v16, %v721_v20  ;;  %v723_v21 = vpop.f32.mrb[35].mxu0 }
 0x213   : > { %845 = vst [vmem:[%s3131_s24 + $0x118] sm:$0xff] %v723_v21  ;;  %v973_v13 = vadd.f32 %v909_v19, %v723_v21  ;;  %v1114_v27 = vmax.f32 %v3287_v18, %v3290_v22  ;;  %3947 = vst [vmem:[#allocation15_spill] sm:$0xff] %v3323_v8  ;;  %v914_v19 = vld [vmem:[%s3158_s14 + $0x140] sm:$0xff]  ;;  %v3334_v21 = vmul.f32 33.333332, %v938_v61  ;;  %v1069_v34 = vmax.f32 %v3321_v11, %v3323_v8  ;;  %v919_v61 = vld [vmem:[%s3158_s14 + $0x168] sm:$0xff] }
 0x214   : > { %v3299_v30 = vmul.f32 33.333332, %v972_v12 }
 0x215   : > { %v3302_v24 = vmul.f32 33.333332, %v973_v13  ;;  %1115 = vmax.xlane.f32.xlu0 %v1114_v27  ;;  %v727_v42 = vpop.f32.mrb[36].mxu0  ;;  %3948 = vst [vmem:[#allocation16_spill] sm:$0xff] %v3334_v21 }
 0x216   : > { %846 = vst [vmem:[%s3131_s24 + $0x120] sm:$0xff] %v727_v42  ;;  %v974_v38 = vadd.f32 %v910_v28, %v727_v42  ;;  %v729_v36 = vpop.f32.mrb[37].mxu0  ;;  %v3337_v28 = vmul.f32 33.333332, %v939_v62  ;;  %v916_v42 = vld [vmem:[%s3158_s14 + $0x150] sm:$0xff] }
 0x217   : > { %847 = vst [vmem:[%s3131_s24 + $0x128] sm:$0xff] %v729_v36  ;;  %v975_v52 = vadd.f32 %v911_v41, %v729_v36  ;;  %v1117_v50 = vmax.f32 %v3299_v30, %v3302_v24  ;;  %v917_v36 = vld [vmem:[%s3158_s14 + $0x158] sm:$0xff] }
 0x218   : > { %v3313_v53 = vmul.f32 33.333332, %v974_v38  ;;  %3949 = vst [vmem:[#allocation17_spill] sm:$0xff] %v3337_v28 }
 0x219   : > { %v3316_v47 = vmul.f32 33.333332, %v975_v52  ;;  %1118 = vmax.xlane.f32.xlu1 %v1117_v50  ;;  %v733_v60 = vpop.f32.mrb[38].mxu0  ;;  %v1066_v50 = vmax.f32 %v3334_v21, %v3337_v28  ;;  %v1608_v21 = vld [vmem:[#allocation5 + $0xc8] sm:$0xff] }
 0x21a   : > { %848 = vst [vmem:[%s3131_s24 + $0x130] sm:$0xff] %v733_v60  ;;  %v976_v4 = vadd.f32 %v912_v1, %v733_v60  ;;  %v735_v6 = vpop.f32.mrb[39].mxu0 }
 0x21b   : > { %849 = vst [vmem:[%s3131_s24 + $0x138] sm:$0xff] %v735_v6  ;;  %v977_v7 = vadd.f32 %v913_v54, %v735_v6  ;;  %v1120_v16 = vmax.f32 %v3313_v53, %v3316_v47  ;;  %v918_v54 = vld [vmem:[%s3158_s14 + $0x160] sm:$0xff] }
 0x21c   : > { %v3329_v20 = vmul.f32 33.333332, %v976_v4 }
 0x21d   : > { %v3332_v58 = vmul.f32 33.333332, %v977_v7  ;;  %1121 = vmax.xlane.f32.xlu0 %v1120_v16  ;;  %v739_v12 = vpop.f32.mrb[40].mxu0 }
 0x21e   : > { %850 = vst [vmem:[%s3131_s24 + $0x140] sm:$0xff] %v739_v12  ;;  %v978_v13 = vadd.f32 %v914_v19, %v739_v12  ;;  %v741_v27 = vpop.f32.mrb[41].mxu0 }
 0x21f   : > { %851 = vst [vmem:[%s3131_s24 + $0x148] sm:$0xff] %v741_v27  ;;  %v979_v29 = vadd.f32 %v915_v55, %v741_v27  ;;  %v1123_v41 = vmax.f32 %v3329_v20, %v3332_v58  ;;  %v920_v55 = vld [vmem:[%s3158_s14 + $0x170] sm:$0xff] }
 0x220   : > { %v3345_v38 = vmul.f32 33.333332, %v978_v13  ;;  %v921_v13 = vld [vmem:[%s3158_s14 + $0x178] sm:$0xff] }
 0x221   : > { %v3348_v40 = vmul.f32 33.333332, %v979_v29  ;;  %1070 = vmax.xlane.f32.xlu0 %v1069_v34  ;;  %1124 = vmax.xlane.f32.xlu1 %v1123_v41  ;;  %v745_v43 = vpop.f32.mrb[42].mxu0 }
 0x222   : > { %852 = vst [vmem:[%s3131_s24 + $0x150] sm:$0xff] %v745_v43  ;;  %v980_v0 = vadd.f32 %v916_v42, %v745_v43  ;;  %v747_v37 = vpop.f32.mrb[43].mxu0  ;;  %v922_v43 = vld [vmem:[%s3158_s14 + $0x180] sm:$0xff] }
 0x223   : > { %853 = vst [vmem:[%s3131_s24 + $0x158] sm:$0xff] %v747_v37  ;;  %v981_v52 = vadd.f32 %v917_v36, %v747_v37  ;;  %v1126_v1 = vmax.f32 %v3345_v38, %v3348_v40  ;;  %v923_v37 = vld [vmem:[%s3158_s14 + $0x188] sm:$0xff] }
 0x224   : > { %v3357_v60 = vmul.f32 33.333332, %v980_v0 }
 0x225   : > { %v3360_v62 = vmul.f32 33.333332, %v981_v52  ;;  %1067 = vmax.xlane.f32.xlu1 %v1066_v50  ;;  %1127 = vmax.xlane.f32.xlu0 %v1126_v1  ;;  %v751_v4 = vpop.f32.mrb[44].mxu0 }
 0x226   : > { %854 = vst [vmem:[%s3131_s24 + $0x160] sm:$0xff] %v751_v4  ;;  %v982_v6 = vadd.f32 %v918_v54, %v751_v4  ;;  %v753_v7 = vpop.f32.mrb[45].mxu0 }
 0x227   : > { %855 = vst [vmem:[%s3131_s24 + $0x168] sm:$0xff] %v753_v7  ;;  %v983_v16 = vadd.f32 %v919_v61, %v753_v7  ;;  %v1129_v19 = vmax.f32 %v3357_v60, %v3360_v62 }
 0x228   : > { %v3367_v12 = vmul.f32 33.333332, %v982_v6  ;;  %v924_v6 = vld [vmem:[%s3158_s14 + $0x190] sm:$0xff] }
 0x229   : > { %v3370_v27 = vmul.f32 33.333332, %v983_v16  ;;  %1130 = vmax.xlane.f32.xlu1 %v1129_v19  ;;  %v757_v29 = vpop.f32.mrb[46].mxu0  ;;  %v925_v16 = vld [vmem:[%s3158_s14 + $0x198] sm:$0xff] }
 0x22a   : > { %856 = vst [vmem:[%s3131_s24 + $0x170] sm:$0xff] %v757_v29  ;;  %v984_v34 = vadd.f32 %v920_v55, %v757_v29  ;;  %v759_v41 = vpop.f32.mrb[47].mxu0 }
 0x22b   : > { %857 = vst [vmem:[%s3131_s24 + $0x178] sm:$0xff] %v759_v41  ;;  %v985_v42 = vadd.f32 %v921_v13, %v759_v41  ;;  %v1132_v36 = vmax.f32 %v3367_v12, %v3370_v27 }
 0x22c   : > { %v3377_v0 = vmul.f32 33.333332, %v984_v34 }
 0x22d   : > { %v3380_v52 = vmul.f32 33.333332, %v985_v42  ;;  %1133 = vmax.xlane.f32.xlu0 %v1132_v36  ;;  %v763_v50 = vpop.f32.mrb[48].mxu0  ;;  %v926_v42 = vld [vmem:[%s3158_s14 + $0x1a0] sm:$0xff] }
 0x22e   : > { %858 = vst [vmem:[%s3131_s24 + $0x180] sm:$0xff] %v763_v50  ;;  %v986_v1 = vadd.f32 %v922_v43, %v763_v50  ;;  %v765_v54 = vpop.f32.mrb[49].mxu0  ;;  %v927_v43 = vld [vmem:[%s3158_s14 + $0x1a8] sm:$0xff] }
 0x22f   : > { %859 = vst [vmem:[%s3131_s24 + $0x188] sm:$0xff] %v765_v54  ;;  %v987_v61 = vadd.f32 %v923_v37, %v765_v54  ;;  %v1135_v4 = vmax.f32 %v3377_v0, %v3380_v52 }
 0x230   : > { %v3387_v7 = vmul.f32 33.333332, %v986_v1 }
 0x231   : > { %v3390_v19 = vmul.f32 33.333332, %v987_v61  ;;  %1136 = vmax.xlane.f32.xlu1 %v1135_v4  ;;  %v769_v55 = vpop.f32.mrb[50].mxu0 }
 0x232   : > { %860 = vst [vmem:[%s3131_s24 + $0x190] sm:$0xff] %v769_v55  ;;  %v988_v13 = vadd.f32 %v924_v6, %v769_v55  ;;  %v771_v29 = vpop.f32.mrb[51].mxu0  ;;  %v928_v6 = vld [vmem:[%s3158_s14 + $0x1b0] sm:$0xff]  ;;  %v929_v55 = vld [vmem:[%s3158_s14 + $0x1b8] sm:$0xff] }
 0x233   : > { %861 = vst [vmem:[%s3131_s24 + $0x198] sm:$0xff] %v771_v29  ;;  %v989_v34 = vadd.f32 %v925_v16, %v771_v29  ;;  %v1138_v41 = vmax.f32 %v3387_v7, %v3390_v19 }
 0x234   : > { %v3397_v36 = vmul.f32 33.333332, %v988_v13 }
 0x235   : > { %v3400_v37 = vmul.f32 33.333332, %v989_v34  ;;  %1139 = vmax.xlane.f32.xlu1 %v1138_v41  ;;  %v775_v50 = vpop.f32.mrb[52].mxu0 }
 0x236   : > { %862 = vst [vmem:[%s3131_s24 + $0x1a0] sm:$0xff] %v775_v50  ;;  %v990_v1 = vadd.f32 %v926_v42, %v775_v50  ;;  %v777_v54 = vpop.f32.mrb[53].mxu0  ;;  %v930_v50 = vld [vmem:[%s3158_s14 + $0x1c0] sm:$0xff] }
 0x237   : > { %863 = vst [vmem:[%s3131_s24 + $0x1a8] sm:$0xff] %v777_v54  ;;  %v991_v61 = vadd.f32 %v927_v43, %v777_v54  ;;  %v1141_v4 = vmax.f32 %v3397_v36, %v3400_v37  ;;  %v931_v54 = vld [vmem:[%s3158_s14 + $0x1c8] sm:$0xff] }
 0x238   : > { %v3407_v16 = vmul.f32 33.333332, %v990_v1 }
 0x239   : > { %v3410_v13 = vmul.f32 33.333332, %v991_v61  ;;  %1142 = vmax.xlane.f32.xlu1 %v1141_v4  ;;  %v781_v29 = vpop.f32.mrb[54].mxu0 }
 0x23a   : > { %3950 = vst [vmem:[#allocation18_spill] sm:$0xff] %v3407_v16  ;;  %864 = vst [vmem:[%s3131_s24 + $0x1b0] sm:$0xff] %v781_v29  ;;  %v992_v34 = vadd.f32 %v928_v6, %v781_v29  ;;  %v783_v41 = vpop.f32.mrb[55].mxu0 }
 0x23b   : > { %3951 = vst [vmem:[#allocation19_spill] sm:$0xff] %v3410_v13  ;;  %865 = vst [vmem:[%s3131_s24 + $0x1b8] sm:$0xff] %v783_v41  ;;  %v993_v42 = vadd.f32 %v929_v55, %v783_v41  ;;  %v1144_v43 = vmax.f32 %v3407_v16, %v3410_v13  ;;  %v932_v41 = vld [vmem:[%s3158_s14 + $0x1d0] sm:$0xff] }
 0x23c   : > { %v3417_v1 = vmul.f32 33.333332, %v992_v34  ;;  %v933_v34 = vld [vmem:[%s3158_s14 + $0x1d8] sm:$0xff] }
 0x23d   : > { %v3420_v61 = vmul.f32 33.333332, %v993_v42  ;;  %1145 = vmax.xlane.f32.xlu1 %v1144_v43  ;;  %v787_v4 = vpop.f32.mrb[56].mxu0 }
 0x23e   : > { %3952 = vst [vmem:[#allocation20_spill] sm:$0xff] %v3417_v1  ;;  %866 = vst [vmem:[%s3131_s24 + $0x1c0] sm:$0xff] %v787_v4  ;;  %v994_v6 = vadd.f32 %v930_v50, %v787_v4  ;;  %v789_v29 = vpop.f32.mrb[57].mxu0 }
 0x23f   : > { %3953 = vst [vmem:[#allocation21_spill] sm:$0xff] %v3420_v61  ;;  %867 = vst [vmem:[%s3131_s24 + $0x1c8] sm:$0xff] %v789_v29  ;;  %v995_v8 = vadd.f32 %v931_v54, %v789_v29  ;;  %v1147_v55 = vmax.f32 %v3417_v1, %v3420_v61  ;;  %v1584_v61 = vld [vmem:[#allocation5 + $0x8] sm:$0xff]  ;;  %v1598_v1 = vld [vmem:[#allocation5 + $0x78] sm:$0xff] }
 0x240   : > { %v3427_v11 = vmul.f32 33.333332, %v994_v6 }
 0x241   : > { %v3430_v13 = vmul.f32 33.333332, %v995_v8  ;;  %1148 = vmax.xlane.f32.xlu1 %v1147_v55  ;;  %v793_v42 = vpop.f32.mrb[58].mxu0  ;;  %v1583_v8 = vld [vmem:[#allocation5] sm:$0xff] }
 0x242   : > { %3954 = vst [vmem:[#allocation22_spill] sm:$0xff] %v3427_v11  ;;  %868 = vst [vmem:[%s3131_s24 + $0x1d0] sm:$0xff] %v793_v42  ;;  %v996_v43 = vadd.f32 %v932_v41, %v793_v42  ;;  %v795_v16 = vpop.f32.mrb[59].mxu0  ;;  %v2225_v41 = vpack.c.bf16 %v1584_v61, %v1583_v8  ;;  %v1586_v61 = vld [vmem:[#allocation5 + $0x18] sm:$0xff]  ;;  %v1587_v8 = vld [vmem:[#allocation5 + $0x20] sm:$0xff] }
 0x243   : > { %3955 = vst [vmem:[#allocation23_spill] sm:$0xff] %v3430_v13  ;;  %869 = vst [vmem:[%s3131_s24 + $0x1d8] sm:$0xff] %v795_v16  ;;  %v997_v50 = vadd.f32 %v933_v34, %v795_v16  ;;  %v1150_v54 = vmax.f32 %v3427_v11, %v3430_v13  ;;  %v2608_v34 = vmov 0.0|0.0   ;;  %v1595_v11 = vld [vmem:[#allocation5 + $0x60] sm:$0xff] }
 0x244   : > { %v3436_v4 = vmul.f32 33.333332, %v996_v43  ;;  %2272 = vmatprep.subr.bf16.mxu1 %v2608_v34  ;;  %2224 = vmatprep.subr.bf16.mxu0 %v2608_v34  ;;  %v1585_v43 = vld [vmem:[#allocation5 + $0x10] sm:$0xff] }
 0x245   : > { %v3438_v29 = vmul.f32 33.333332, %v997_v50  ;;  %1151 = vmax.xlane.f32.xlu0 %v1150_v54  ;;  %v3440_v6 = vpop.f32.mrb[60].mxu0  ;;  %2288 = vmatpush1.bf16.msra.mxu1 %v2225_v41  ;;  %v2228_v54 = vpack.c.bf16 %v1586_v61, %v1585_v43  ;;  %v1591_v61 = vld [vmem:[#allocation5 + $0x40] sm:$0xff] }
 0x246   : > { %3956 = vst [vmem:[#allocation24_spill] sm:$0xff] %v3436_v4  ;;  %870 = vst [vmem:[%s3131_s24 + $0x1e0] sm:$0xff] %v3440_v6  ;;  %v3444_v55 = vpop.f32.mrb[61].mxu0  ;;  %2226 = vmatpush1.bf16.msra.mxu0 %v2225_v41  ;;  %2273 = vmatprep.subr.bf16.mxu1 %v2608_v34  ;;  %v1588_v41 = vld [vmem:[#allocation5 + $0x28] sm:$0xff] }
 0x247   : > { %3957 = vst [vmem:[#allocation25_spill] sm:$0xff] %v3438_v29  ;;  %v1153_v16 = vmax.f32 %v3436_v4, %v3438_v29  ;;  %871 = vst [vmem:[%s3131_s24 + $0x1e8] sm:$0xff] %v3444_v55  ;;  %2227 = vmatprep.subr.bf16.mxu0 %v2608_v34  ;;  %v1589_v29 = vld [vmem:[#allocation5 + $0x30] sm:$0xff]  ;;  %v1590_v4 = vld [vmem:[#allocation5 + $0x38] sm:$0xff] }
 0x248   : > { %v2234_v43 = vpack.c.bf16 %v1590_v4, %v1589_v29  ;;  %v1596_v4 = vld [vmem:[#allocation5 + $0x68] sm:$0xff] }
 0x249   : > { %1154 = vmax.xlane.f32.xlu1 %v1153_v16  ;;  %v3452_v42 = vpop.f32.mrb[62].mxu0  ;;  %2289 = vmatpush1.bf16.msra.mxu1 %v2228_v54  ;;  %v2231_v16 = vpack.c.bf16 %v1588_v41, %v1587_v8  ;;  %v1593_v8 = vld [vmem:[#allocation5 + $0x50] sm:$0xff]  ;;  %v1594_v41 = vld [vmem:[#allocation5 + $0x58] sm:$0xff]  ;;  %v2243_v29 = vpack.c.bf16 %v1596_v4, %v1595_v11 }
 0x24a   : > { %872 = vst [vmem:[%s3131_s24 + $0x1f0] sm:$0xff] %v3452_v42  ;;  %v3457_v50 = vpop.f32.mrb[63].mxu0  ;;  %2229 = vmatpush1.bf16.msra.mxu0 %v2228_v54  ;;  %2274 = vmatprep.subr.bf16.mxu1 %v2608_v34  ;;  %v1592_v54 = vld [vmem:[#allocation5 + $0x48] sm:$0xff]  ;;  %v1601_v11 = vld [vmem:[#allocation5 + $0x90] sm:$0xff] }
 0x24b   : > { %873 = vst [vmem:[%s3131_s24 + $0x1f8] sm:$0xff] %v3457_v50  ;;  %2230 = vmatprep.subr.bf16.mxu0 %v2608_v34  ;;  %v2237_v13 = vpack.c.bf16 %v1592_v54, %v1591_v61  ;;  %v1599_v61 = vld [vmem:[#allocation5 + $0x80] sm:$0xff]  ;;  %v1600_v54 = vld [vmem:[#allocation5 + $0x88] sm:$0xff] }
 0x24d   : > { %2290 = vmatpush1.bf16.msra.mxu1 %v2231_v16 }
 0x24e   : > { %2232 = vmatpush1.bf16.msra.mxu0 %v2231_v16  ;;  %2275 = vmatprep.subr.bf16.mxu1 %v2608_v34  ;;  %v2240_v16 = vpack.c.bf16 %v1594_v41, %v1593_v8  ;;  %v1162_v8 = vlaneseq  ;;  %v2249_v41 = vpack.c.bf16 %v1600_v54, %v1599_v61  ;;  %v1606_v54 = vld [vmem:[#allocation5 + $0xb8] sm:$0xff] }
 0x24f   : > { %2233 = vmatprep.subr.bf16.mxu0 %v2608_v34 }
 0x250   : > { %v1163_v4 = vand.u32 127, %v1162_v8 }
 0x251   : > { %2291 = vmatpush1.bf16.msra.mxu1 %v2234_v43 }
 0x252   : > { %2235 = vmatpush1.bf16.msra.mxu0 %v2234_v43  ;;  %2276 = vmatprep.subr.bf16.mxu1 %v2608_v34  ;;  %v1597_v43 = vld [vmem:[#allocation5 + $0x70] sm:$0xff]  ;;  %v1164_v28 = vadd.s32 128, %v1163_v4  ;;  %v3480_v8 = vcvt.s32.f32 %v1163_v4 }
 0x253   : > { %2236 = vmatprep.subr.bf16.mxu0 %v2608_v34 }
 0x255   : > { %2292 = vmatpush1.bf16.msra.mxu1 %v2237_v13 }
 0x256   : > { %2238 = vmatpush1.bf16.msra.mxu0 %v2237_v13  ;;  %2277 = vmatprep.subr.bf16.mxu1 %v2608_v34  ;;  %v2246_v13 = vpack.c.bf16 %v1598_v1, %v1597_v43  ;;  %v1604_v43 = vld [vmem:[#allocation5 + $0xa8] sm:$0xff] }
 0x257   : > { %2239 = vmatprep.subr.bf16.mxu0 %v2608_v34 }
 0x259   : > { %2293 = vmatpush1.bf16.msra.mxu1 %v2240_v16 }
 0x25a   : > { %2241 = vmatpush1.bf16.msra.mxu0 %v2240_v16  ;;  %2278 = vmatprep.subr.bf16.mxu1 %v2608_v34  ;;  %v1602_v16 = vld [vmem:[#allocation5 + $0x98] sm:$0xff] }
 0x25b   : > { %2242 = vmatprep.subr.bf16.mxu0 %v2608_v34  ;;  %v2252_v1 = vpack.c.bf16 %v1602_v16, %v1601_v11  ;;  %v3482_v11 = vcvt.s32.f32 %v1164_v28  ;;  %v1607_v16 = vld [vmem:[#allocation5 + $0xc0] sm:$0xff] }
 0x25c   : > { %v2261_v28 = vpack.c.bf16 %v1608_v21, %v1607_v16  ;;  %v1611_v16 = vld [vmem:[#allocation5 + $0xe0] sm:$0xff] }
 0x25d   : > { %2294 = vmatpush1.bf16.msra.mxu1 %v2243_v29 }
 0x25e   : > { %2244 = vmatpush1.bf16.msra.mxu0 %v2243_v29  ;;  %2279 = vmatprep.subr.bf16.mxu1 %v2608_v34  ;;  %v1603_v29 = vld [vmem:[#allocation5 + $0xa0] sm:$0xff] }
 0x25f   : > { %2245 = vmatprep.subr.bf16.mxu0 %v2608_v34  ;;  %v2255_v61 = vpack.c.bf16 %v1604_v43, %v1603_v29 }
 0x261   : > { %2295 = vmatpush1.bf16.msra.mxu1 %v2246_v13 }
 0x262   : > { %2247 = vmatpush1.bf16.msra.mxu0 %v2246_v13  ;;  %2280 = vmatprep.subr.bf16.mxu1 %v2608_v34  ;;  %v1605_v13 = vld [vmem:[#allocation5 + $0xb0] sm:$0xff] }
 0x263   : > { %2248 = vmatprep.subr.bf16.mxu0 %v2608_v34 }
 0x265   : > { %2296 = vmatpush1.bf16.msra.mxu1 %v2249_v41 }
 0x266   : > { %2250 = vmatpush1.bf16.msra.mxu0 %v2249_v41  ;;  %2281 = vmatprep.subr.bf16.mxu1 %v2608_v34  ;;  %v2258_v41 = vpack.c.bf16 %v1606_v54, %v1605_v13  ;;  %v1610_v13 = vld [vmem:[#allocation5 + $0xd8] sm:$0xff] }
 0x267   : > { %2251 = vmatprep.subr.bf16.mxu0 %v2608_v34 }
 0x269   : > { %2297 = vmatpush1.bf16.msra.mxu1 %v2252_v1 }
 0x26a   : > { %2253 = vmatpush1.bf16.msra.mxu0 %v2252_v1  ;;  %2282 = vmatprep.subr.bf16.mxu1 %v2608_v34 }
 0x26b   : > { %2254 = vmatprep.subr.bf16.mxu0 %v2608_v34 }
 0x26d   : > { %2298 = vmatpush1.bf16.msra.mxu1 %v2255_v61 }
 0x26e   : > { %2256 = vmatpush1.bf16.msra.mxu0 %v2255_v61  ;;  %2283 = vmatprep.subr.bf16.mxu1 %v2608_v34  ;;  %v1609_v61 = vld [vmem:[#allocation5 + $0xd0] sm:$0xff] }
 0x26f   : > { %2257 = vmatprep.subr.bf16.mxu0 %v2608_v34  ;;  %v2264_v21 = vpack.c.bf16 %v1610_v13, %v1609_v61  ;;  %v1613_v13 = vld [vmem:[#allocation5 + $0xf0] sm:$0xff] }
 0x271   : > { %2299 = vmatpush1.bf16.msra.mxu1 %v2258_v41 }
 0x272   : > { %v1080_v1 = vpop.xlane.xlu0 %1079  ;;  %2259 = vmatpush1.bf16.msra.mxu0 %v2258_v41  ;;  %2284 = vmatprep.subr.bf16.mxu1 %v2608_v34 }
 0x273   : > { %vm1175_vm0 = vcmp.eq.f32.partialorder %v3167_v5, %v1080_v1  ;;  %vm1176_vm1 = vcmp.eq.f32.partialorder %v3170_v57, %v1080_v1  ;;  %2260 = vmatprep.subr.bf16.mxu0 %v2608_v34  ;;  %v1612_v1 = vld [vmem:[#allocation5 + $0xe8] sm:$0xff] }
 0x274   : > { %v1239_v29 = vsel %vm1175_vm0, %v3480_v8, 256.0  ;;  %v1240_v4 = vsel %vm1176_vm1, %v3482_v11, 256.0 }
 0x275   : > { %v1307_v43 = vmin.f32 %v1239_v29, %v1240_v4  ;;  %2300 = vmatpush1.bf16.msra.mxu1 %v2261_v28  ;;  %v934_v4 = vld [vmem:[%s3158_s14 + $0x1e0] sm:$0xff] }
 0x276   : > { %v1083_v54 = vpop.xlane.xlu1 %1082  ;;  %2262 = vmatpush1.bf16.msra.mxu0 %v2261_v28  ;;  %2285 = vmatprep.subr.bf16.mxu1 %v2608_v34  ;;  %v2267_v28 = vpack.c.bf16 %v1612_v1, %v1611_v16  ;;  %v878_v16 = vld [vmem:[%s3158_s14 + $0x20] sm:$0xff] }
 0x277   : > { %vm1177_vm2 = vcmp.eq.f32.partialorder %v3177_v17, %v1083_v54  ;;  %vm1178_vm3 = vcmp.eq.f32.partialorder %v3180_v9, %v1083_v54  ;;  %1308 = vmin.xlane.f32.xlu0 %v1307_v43  ;;  %2263 = vmatprep.subr.bf16.mxu0 %v2608_v34  ;;  %v935_v43 = vld [vmem:[%s3158_s14 + $0x1e8] sm:$0xff]  ;;  %v1614_v54 = vld [vmem:[#allocation5 + $0xf8] sm:$0xff] }
 0x278   : > { %v1241_v5 = vsel %vm1177_vm2, %v3480_v8, 256.0  ;;  %v1242_v57 = vsel %vm1178_vm3, %v3482_v11, 256.0 }
 0x279   : > { %v1310_v41 = vmin.f32 %v1241_v5, %v1242_v57  ;;  %2301 = vmatpush1.bf16.msra.mxu1 %v2264_v21  ;;  %v999_v5 = vadd.f32 %v935_v43, %v3444_v55 }
 0x27a   : > { %v1086_v17 = vpop.xlane.xlu0 %1085  ;;  %2265 = vmatpush1.bf16.msra.mxu0 %v2264_v21  ;;  %2286 = vmatprep.subr.bf16.mxu1 %v2608_v34 }
 0x27b   : > { %vm1179_vm4 = vcmp.eq.f32.partialorder %v3187_v23, %v1086_v17  ;;  %vm1180_vm5 = vcmp.eq.f32.partialorder %v3190_v26, %v1086_v17  ;;  %1311 = vmin.xlane.f32.xlu0 %v1310_v41  ;;  %2266 = vmatprep.subr.bf16.mxu0 %v2608_v34  ;;  %v998_v26 = vadd.f32 %v934_v4, %v3440_v6  ;;  %v3520_v55 = vmul.f32 33.333332, %v999_v5  ;;  %v881_v4 = vld [vmem:[%s3158_s14 + $0x38] sm:$0xff] }
 0x27c   : > { %v1243_v9 = vsel %vm1179_vm4, %v3480_v8, 256.0  ;;  %v1244_v29 = vsel %vm1180_vm5, %v3482_v11, 256.0  ;;  %v2270_v41 = vpack.c.bf16 %v1614_v54, %v1613_v13  ;;  %v942_v17 = vadd.f32 %v878_v16, %v3147_v3  ;;  %v937_v54 = vld [vmem:[%s3158_s14 + $0x1f8] sm:$0xff] }
 0x27d   : > { %v1313_v61 = vmin.f32 %v1243_v9, %v1244_v29  ;;  %2302 = vmatpush1.bf16.msra.mxu1 %v2267_v28  ;;  %v3518_v6 = vmul.f32 33.333332, %v998_v26  ;;  %v2439_v26 = vld [vmem:[%s3131_s24 + $0x30] sm:$0xff]  ;;  %v1001_v16 = vadd.f32 %v937_v54, %v3457_v50 }
 0x27e   : > { %v1089_v23 = vpop.xlane.xlu1 %1088  ;;  %2268 = vmatpush1.bf16.msra.mxu0 %v2267_v28  ;;  %2287 = vmatprep.subr.bf16.mxu1 %v2608_v34  ;;  %v936_v28 = vld [vmem:[%s3158_s14 + $0x1f0] sm:$0xff] }
 0x27f   : > { %vm1181_vm6 = vcmp.eq.f32.partialorder %v3197_v14, %v1089_v23  ;;  %vm1182_vm7 = vcmp.eq.f32.partialorder %v3200_v31, %v1089_v23  ;;  %1314 = vmin.xlane.f32.xlu0 %v1313_v61  ;;  %2269 = vmatprep.subr.bf16.mxu0 %v2608_v34  ;;  %v879_v14 = vld [vmem:[%s3158_s14 + $0x28] sm:$0xff]  ;;  %v1156_v3 = vmax.f32 %v3518_v6, %v3520_v55  ;;  %v3533_v61 = vmul.f32 33.333332, %v942_v17 }
 0x280   : > { %v1245_v57 = vsel %vm1181_vm6, %v3480_v8, 256.0  ;;  %v1246_v21 = vsel %vm1182_vm7, %v3482_v11, 256.0 }
 0x281   : > { %v1316_v1 = vmin.f32 %v1245_v57, %v1246_v21  ;;  %2303 = vmatpush1.bf16.msra.mxu1 %v2270_v41  ;;  %v2440_v57 = vld [vmem:[%s3131_s24 + $0x38] sm:$0xff]  ;;  %s2505_s24 = scalar_lea.vmem %s2504_s12, 16384 }
 0x282   : > { %v1092_v31 = vpop.xlane.xlu0 %1091  ;;  %2271 = vmatpush1.bf16.msra.mxu0 %v2270_v41  ;;  %v1000_v41 = vadd.f32 %v936_v28, %v3452_v42  ;;  %p2507_p3 = scmp.lt.s32.totalorder %s2505_s24, %s2499_s10 }
 0x283   : > { %vm1183_vm8 = vcmp.eq.f32.partialorder %v3207_v39, %v1092_v31  ;;  %vm1184_vm9 = vcmp.eq.f32.partialorder %v3210_v45, %v1092_v31  ;;  %1317 = vmin.xlane.f32.xlu0 %v1316_v1  ;;  %v943_v39 = vadd.f32 %v879_v14, %v3151_v46  ;;  %v880_v45 = vld [vmem:[%s3158_s14 + $0x30] sm:$0xff] }
 0x284   : > { %v1247_v9 = vsel %vm1183_vm8, %v3480_v8, 256.0  ;;  %v1248_v29 = vsel %vm1184_vm9, %v3482_v11, 256.0  ;;  %v944_v5 = vadd.f32 %v2439_v26, %v880_v45  ;;  %p2508_p7 = por %p2507_p3, %p2506_p13 }
 0x285   : > { %v1319_v34 = vmin.f32 %v1247_v9, %v1248_v29  ;;  %v3538_v23 = vmul.f32 33.333332, %v943_v39 }
 0x286   : > { %v1095_v43 = vpop.xlane.xlu1 %1094  ;;  %v3548_v31 = vmul.f32 33.333332, %v944_v5  ;;  %p2509_p9 = pnand %p2508_p7, %p2502_p10 }
 0x287   : > { %vm1185_vm10 = vcmp.eq.f32.partialorder %v3217_v44, %v1095_v43  ;;  %vm1186_vm11 = vcmp.eq.f32.partialorder %v3220_v49, %v1095_v43  ;;  %1320 = vmin.xlane.f32.xlu0 %v1319_v34  ;;  %v945_v44 = vadd.f32 %v2440_v57, %v881_v4  ;;  %v1072_v9 = vmax.f32 %v3533_v61, %v3538_v23 }
 0x288   : > { %v1249_v13 = vsel %vm1185_vm10, %v3480_v8, 256.0  ;;  %v1250_v46 = vsel %vm1186_vm11, %v3482_v11, 256.0 }
 0x289   : > { %v1322_v21 = vmin.f32 %v1249_v13, %v1250_v46  ;;  %v3550_v17 = vmul.f32 33.333332, %v945_v44 }
 0x28a   : > { %v1098_v49 = vpop.xlane.xlu0 %1097 }
 0x28b   : > { %vm1187_vm12 = vcmp.eq.f32.partialorder %v3227_v59, %v1098_v49  ;;  %vm1188_vm13 = vcmp.eq.f32.partialorder %v3230_v56, %v1098_v49  ;;  %1323 = vmin.xlane.f32.xlu1 %v1322_v21  ;;  %1157 = vmax.xlane.f32.xlu0 %v1156_v3  ;;  %v3556_v59 = vmul.f32 33.333332, %v1000_v41  ;;  %v3558_v56 = vmul.f32 33.333332, %v1001_v16 }
 0x28c   : > { %v1251_v1 = vsel %vm1187_vm12, %v3480_v8, 256.0  ;;  %v1252_v14 = vsel %vm1188_vm13, %v3482_v11, 256.0  ;;  %v1075_v45 = vmax.f32 %v3548_v31, %v3550_v17 }
 0x28d   : > { %v1325_v42 = vmin.f32 %v1251_v1, %v1252_v14 }
 0x28e   : > { %v1101_v29 = vpop.xlane.xlu1 %1100 }
 0x28f   : > { %vm1189_vm14 = vcmp.eq.f32.partialorder %v3237_v15, %v1101_v29  ;;  %vm1190_vm15 = vcmp.eq.f32.partialorder %v3240_v10, %v1101_v29  ;;  %1073 = vmax.xlane.f32.xlu1 %v1072_v9  ;;  %1326 = vmin.xlane.f32.xlu0 %v1325_v42  ;;  %v1159_v15 = vmax.f32 %v3556_v59, %v3558_v56 }
 0x290   : > { %v1253_v50 = vsel %vm1189_vm14, %v3480_v8, 256.0  ;;  %v1254_v39 = vsel %vm1190_vm15, %v3482_v11, 256.0 }
 0x291   : > { %v1328_v34 = vmin.f32 %v1253_v50, %v1254_v39 }
 0x292   : > { %v1104_v4 = vpop.xlane.xlu0 %1103 }
 0x293   : > { %vm1191_vm0 = vcmp.eq.f32.partialorder %v3247_v25, %v1104_v4  ;;  %vm1192_vm1 = vcmp.eq.f32.partialorder %v3250_v33, %v1104_v4  ;;  %1329 = vmin.xlane.f32.xlu1 %v1328_v34  ;;  %1076 = vmax.xlane.f32.xlu0 %v1075_v45 }
 0x294   : > { %v1255_v10 = vsel %vm1191_vm0, %v3480_v8, 256.0  ;;  %v1256_v43 = vsel %vm1192_vm1, %v3482_v11, 256.0 }
 0x295   : > { %v1331_v3 = vmin.f32 %v1255_v10, %v1256_v43 }
 0x296   : > { %v1107_v28 = vpop.xlane.xlu1 %1106 }
 0x297   : > { %vm1193_vm2 = vcmp.eq.f32.partialorder %v3257_v32, %v1107_v28  ;;  %vm1194_vm3 = vcmp.eq.f32.partialorder %v3260_v35, %v1107_v28  ;;  %1160 = vmax.xlane.f32.xlu1 %v1159_v15  ;;  %1332 = vmin.xlane.f32.xlu0 %v1331_v3 }
 0x298   : > { %v1257_v25 = vsel %vm1193_vm2, %v3480_v8, 256.0  ;;  %v1258_v33 = vsel %vm1194_vm3, %v3482_v11, 256.0 }
 0x299   : > { %v1334_v13 = vmin.f32 %v1257_v25, %v1258_v33 }
 0x29a   : > { %v1110_v46 = vpop.xlane.xlu0 %1109 }
 0x29b   : > { %vm1195_vm4 = vcmp.eq.f32.partialorder %v3267_v48, %v1110_v46  ;;  %vm1196_vm5 = vcmp.eq.f32.partialorder %v3270_v51, %v1110_v46  ;;  %1335 = vmin.xlane.f32.xlu1 %v1334_v13  ;;  %v3958_v46 = vld [vmem:[#allocation16_spill] sm:$0xff] }
 0x29c   : > { %v1259_v54 = vsel %vm1195_vm4, %v3480_v8, 256.0  ;;  %v1260_v26 = vsel %vm1196_vm5, %v3482_v11, 256.0 }
 0x29d   : > { %v1337_v32 = vmin.f32 %v1259_v54, %v1260_v26  ;;  %v3960_v54 = vld [vmem:[#allocation18_spill] sm:$0xff]  ;;  %v3961_v26 = vld [vmem:[#allocation19_spill] sm:$0xff] }
 0x29e   : > { %v1113_v5 = vpop.xlane.xlu1 %1112 }
 0x29f   : > { %vm1197_vm6 = vcmp.eq.f32.partialorder %v3277_v2, %v1113_v5  ;;  %vm1198_vm7 = vcmp.eq.f32.partialorder %v3280_v63, %v1113_v5  ;;  %1338 = vmin.xlane.f32.xlu0 %v1337_v32 }
 0x2a0   : > { %v1261_v35 = vsel %vm1197_vm6, %v3480_v8, 256.0  ;;  %v1262_v57 = vsel %vm1198_vm7, %v3482_v11, 256.0 }
 0x2a1   : > { %v1340_v44 = vmin.f32 %v1261_v35, %v1262_v57 }
 0x2a2   : > { %v1116_v48 = vpop.xlane.xlu0 %1115 }
 0x2a3   : > { %vm1199_vm8 = vcmp.eq.f32.partialorder %v3287_v18, %v1116_v48  ;;  %vm1200_vm9 = vcmp.eq.f32.partialorder %v3290_v22, %v1116_v48  ;;  %1341 = vmin.xlane.f32.xlu1 %v1340_v44  ;;  %v3962_v44 = vld [vmem:[#allocation14_spill] sm:$0xff]  ;;  %v3963_v48 = vld [vmem:[#allocation15_spill] sm:$0xff] }
 0x2a4   : > { %v1263_v51 = vsel %vm1199_vm8, %v3480_v8, 256.0  ;;  %v1264_v21 = vsel %vm1200_vm9, %v3482_v11, 256.0 }
 0x2a5   : > { %v1343_v49 = vmin.f32 %v1263_v51, %v1264_v21  ;;  %v3964_v51 = vld [vmem:[#allocation20_spill] sm:$0xff]  ;;  %v3965_v21 = vld [vmem:[#allocation21_spill] sm:$0xff] }
 0x2a6   : > { %v1119_v2 = vpop.xlane.xlu1 %1118 }
 0x2a7   : > { %vm1201_vm10 = vcmp.eq.f32.partialorder %v3299_v30, %v1119_v2  ;;  %vm1202_vm11 = vcmp.eq.f32.partialorder %v3302_v24, %v1119_v2  ;;  %1344 = vmin.xlane.f32.xlu0 %v1343_v49 }
 0x2a8   : > { %v1265_v63 = vsel %vm1201_vm10, %v3480_v8, 256.0  ;;  %v1266_v41 = vsel %vm1202_vm11, %v3482_v11, 256.0 }
 0x2a9   : > { %v1346_v16 = vmin.f32 %v1265_v63, %v1266_v41 }
 0x2aa   : > { %v1122_v18 = vpop.xlane.xlu0 %1121 }
 0x2ab   : > { %vm1203_vm12 = vcmp.eq.f32.partialorder %v3313_v53, %v1122_v18  ;;  %vm1204_vm13 = vcmp.eq.f32.partialorder %v3316_v47, %v1122_v18  ;;  %1347 = vmin.xlane.f32.xlu1 %v1346_v16 }
 0x2ac   : > { %v1267_v22 = vsel %vm1203_vm12, %v3480_v8, 256.0  ;;  %v1268_v1 = vsel %vm1204_vm13, %v3482_v11, 256.0 }
 0x2ad   : > { %v1349_v14 = vmin.f32 %v1267_v22, %v1268_v1  ;;  %v3966_v1 = vld [vmem:[#allocation22_spill] sm:$0xff] }
 0x2ae   : > { %v1125_v30 = vpop.xlane.xlu1 %1124  ;;  %v3594_v9 = vpop.xlane.xlu0 %1070 }
 0x2af   : > { %vm1205_vm14 = vcmp.eq.f32.partialorder %v3329_v20, %v1125_v30  ;;  %vm1206_vm15 = vcmp.eq.f32.partialorder %v3332_v58, %v1125_v30  ;;  %1350 = vmin.xlane.f32.xlu0 %v1349_v14  ;;  %v3967_v14 = vld [vmem:[#allocation23_spill] sm:$0xff] }
 0x2b0   : > { %v1269_v24 = vsel %vm1205_vm14, %v3480_v8, 256.0  ;;  %v1270_v53 = vsel %vm1206_vm15, %v3482_v11, 256.0 }
 0x2b1   : > { %v1352_v42 = vmin.f32 %v1269_v24, %v1270_v53 }
 0x2b2   : > { %v1068_v47 = vpop.xlane.xlu1 %1067  ;;  %v1128_v29 = vpop.xlane.xlu0 %1127 }
 0x2b3   : > { %vm1207_vm0 = vcmp.eq.f32.partialorder %v3345_v38, %v1128_v29  ;;  %vm1208_vm1 = vcmp.eq.f32.partialorder %v3348_v40, %v1128_v29  ;;  %1353 = vmin.xlane.f32.xlu1 %v1352_v42  ;;  %vm1167_vm12 = vcmp.eq.f32.partialorder %v3958_v46, %v1068_v47  ;;  %v3969_v29 = vld [vmem:[#allocation25_spill] sm:$0xff] }
 0x2b4   : > { %v1271_v50 = vsel %vm1207_vm0, %v3480_v8, 256.0  ;;  %v1272_v39 = vsel %vm1208_vm1, %v3482_v11, 256.0  ;;  %v1231_v35 = vsel %vm1167_vm12, %v3480_v8, 256.0  ;;  %vm1169_vm0 = vcmp.eq.f32.partialorder %v3962_v44, %v3594_v9 }
 0x2b5   : > { %v1355_v20 = vmin.f32 %v1271_v50, %v1272_v39  ;;  %vm1170_vm1 = vcmp.eq.f32.partialorder %v3963_v48, %v3594_v9  ;;  %v1233_v18 = vsel %vm1169_vm0, %v3480_v8, 256.0 }
 0x2b6   : > { %v1131_v34 = vpop.xlane.xlu1 %1130  ;;  %v1234_v22 = vsel %vm1170_vm1, %v3482_v11, 256.0 }
 0x2b7   : > { %vm1209_vm2 = vcmp.eq.f32.partialorder %v3357_v60, %v1131_v34  ;;  %vm1210_vm3 = vcmp.eq.f32.partialorder %v3360_v62, %v1131_v34  ;;  %1356 = vmin.xlane.f32.xlu0 %v1355_v20  ;;  %v1298_v24 = vmin.f32 %v1233_v18, %v1234_v22 }
 0x2b8   : > { %v1273_v58 = vsel %vm1209_vm2, %v3480_v8, 256.0  ;;  %v1274_v45 = vsel %vm1210_vm3, %v3482_v11, 256.0 }
 0x2b9   : > { %v1358_v4 = vmin.f32 %v1273_v58, %v1274_v45  ;;  %v2609_v58 = vmov 1.0  }
 0x2ba   : > { %v1134_v38 = vpop.xlane.xlu0 %1133 }
 0x2bb   : > { %vm1211_vm4 = vcmp.eq.f32.partialorder %v3367_v12, %v1134_v38  ;;  %vm1212_vm5 = vcmp.eq.f32.partialorder %v3370_v27, %v1134_v38  ;;  %1359 = vmin.xlane.f32.xlu1 %v1358_v4 }
 0x2bc   : > { %v1275_v40 = vsel %vm1211_vm4, %v3480_v8, 256.0  ;;  %v1276_v15 = vsel %vm1212_vm5, %v3482_v11, 256.0 }
 0x2bd   : > { %v1361_v10 = vmin.f32 %v1275_v40, %v1276_v15 }
 0x2be   : > { %v1137_v60 = vpop.xlane.xlu1 %1136 }
 0x2bf   : > { %vm1213_vm6 = vcmp.eq.f32.partialorder %v3377_v0, %v1137_v60  ;;  %vm1214_vm7 = vcmp.eq.f32.partialorder %v3380_v52, %v1137_v60  ;;  %1362 = vmin.xlane.f32.xlu0 %v1361_v10 }
 0x2c0   : > { %v1277_v62 = vsel %vm1213_vm6, %v3480_v8, 256.0  ;;  %v1278_v43 = vsel %vm1214_vm7, %v3482_v11, 256.0 }
 0x2c1   : > { %v1364_v3 = vmin.f32 %v1277_v62, %v1278_v43 }
 0x2c2   : > { %v1140_v12 = vpop.xlane.xlu1 %1139 }
 0x2c3   : > { %vm1215_vm8 = vcmp.eq.f32.partialorder %v3387_v7, %v1140_v12  ;;  %vm1216_vm9 = vcmp.eq.f32.partialorder %v3390_v19, %v1140_v12  ;;  %1365 = vmin.xlane.f32.xlu1 %v1364_v3  ;;  %v3959_v19 = vld [vmem:[#allocation17_spill] sm:$0xff] }
 0x2c4   : > { %v1279_v27 = vsel %vm1215_vm8, %v3480_v8, 256.0  ;;  %v1280_v28 = vsel %vm1216_vm9, %v3482_v11, 256.0  ;;  %vm1168_vm13 = vcmp.eq.f32.partialorder %v3959_v19, %v1068_v47  ;;  %v3968_v47 = vld [vmem:[#allocation24_spill] sm:$0xff] }
 0x2c5   : > { %v1367_v25 = vmin.f32 %v1279_v27, %v1280_v28  ;;  %v1232_v57 = vsel %vm1168_vm13, %v3482_v11, 256.0 }
 0x2c6   : > { %v1143_v0 = vpop.xlane.xlu1 %1142  ;;  %v1295_v41 = vmin.f32 %v1231_v35, %v1232_v57 }
 0x2c7   : > { %vm1217_vm10 = vcmp.eq.f32.partialorder %v3397_v36, %v1143_v0  ;;  %vm1218_vm11 = vcmp.eq.f32.partialorder %v3400_v37, %v1143_v0  ;;  %1368 = vmin.xlane.f32.xlu0 %v1367_v25 }
 0x2c8   : > { %v1281_v52 = vsel %vm1217_vm10, %v3480_v8, 256.0  ;;  %v1282_v33 = vsel %vm1218_vm11, %v3482_v11, 256.0 }
 0x2c9   : > { %v1370_v13 = vmin.f32 %v1281_v52, %v1282_v33 }
 0x2ca   : > { %v1146_v7 = vpop.xlane.xlu1 %1145 }
 0x2cb   : > { %vm1219_vm14 = vcmp.eq.f32.partialorder %v3960_v54, %v1146_v7  ;;  %vm1220_vm15 = vcmp.eq.f32.partialorder %v3961_v26, %v1146_v7  ;;  %1371 = vmin.xlane.f32.xlu1 %v1370_v13 }
 0x2cc   : > { %v1283_v36 = vsel %vm1219_vm14, %v3480_v8, 256.0  ;;  %v1284_v37 = vsel %vm1220_vm15, %v3482_v11, 256.0 }
 0x2cd   : > { %v1373_v32 = vmin.f32 %v1283_v36, %v1284_v37 }
 0x2ce   : > { %v1149_v5 = vpop.xlane.xlu1 %1148 }
 0x2cf   : > { %vm1221_vm2 = vcmp.eq.f32.partialorder %v3964_v51, %v1149_v5  ;;  %vm1222_vm3 = vcmp.eq.f32.partialorder %v3965_v21, %v1149_v5  ;;  %1374 = vmin.xlane.f32.xlu0 %v1373_v32 }
 0x2d0   : > { %v1285_v49 = vsel %vm1221_vm2, %v3480_v8, 256.0  ;;  %v1286_v2 = vsel %vm1222_vm3, %v3482_v11, 256.0 }
 0x2d1   : > { %v1376_v63 = vmin.f32 %v1285_v49, %v1286_v2 }
 0x2d2   : > { %v1152_v16 = vpop.xlane.xlu0 %1151 }
 0x2d3   : > { %vm1223_vm4 = vcmp.eq.f32.partialorder %v3966_v1, %v1152_v16  ;;  %vm1224_vm5 = vcmp.eq.f32.partialorder %v3967_v14, %v1152_v16  ;;  %1377 = vmin.xlane.f32.xlu1 %v1376_v63  ;;  %1296 = vmin.xlane.f32.xlu0 %v1295_v41 }
 0x2d4   : > { %v1287_v30 = vsel %vm1223_vm4, %v3480_v8, 256.0  ;;  %v1288_v9 = vsel %vm1224_vm5, %v3482_v11, 256.0 }
 0x2d5   : > { %v1379_v53 = vmin.f32 %v1287_v30, %v1288_v9 }
 0x2d6   : > { %v1155_v42 = vpop.xlane.xlu1 %1154 }
 0x2d7   : > { %vm1225_vm6 = vcmp.eq.f32.partialorder %v3968_v47, %v1155_v42  ;;  %vm1226_vm7 = vcmp.eq.f32.partialorder %v3969_v29, %v1155_v42  ;;  %1299 = vmin.xlane.f32.xlu0 %v1298_v24  ;;  %1380 = vmin.xlane.f32.xlu1 %v1379_v53 }
 0x2d8   : > { %v1289_v50 = vsel %vm1225_vm6, %v3480_v8, 256.0  ;;  %v1290_v39 = vsel %vm1226_vm7, %v3482_v11, 256.0 }
 0x2d9   : > { %v1382_v20 = vmin.f32 %v1289_v50, %v1290_v39 }
 0x2db   : > { %1383 = vmin.xlane.f32.xlu1 %v1382_v20 }
 0x304   : > { %v1309_v34 = vpop.xlane.xlu0 %1308 }
 0x305   : > { %vm1399_vm8 = vcmp.eq.f32.partialorder %v3480_v8, %v1309_v34  ;;  %vm1400_vm9 = vcmp.eq.f32.partialorder %v3482_v11, %v1309_v34 }
 0x306   : > { %2122 = vmatprep.mubr.msk.f32.mxu1 %vm1400_vm9, %v2609_v58 }
 0x307   : > { %2123 = vmatmul.mubr.msk.f32.vlgmr.msra.gmra.mrb[0].mxu1 %vm1399_vm8, %v2609_v58 }
 0x308   : > { %v1312_v45 = vpop.xlane.xlu0 %1311 }
 0x309   : > { %vm1401_vm10 = vcmp.eq.f32.partialorder %v3480_v8, %v1312_v45  ;;  %vm1402_vm11 = vcmp.eq.f32.partialorder %v3482_v11, %v1312_v45 }
 0x30a   : > { %2124 = vmatprep.mubr.msk.f32.mxu1 %vm1402_vm11, %v2609_v58 }
 0x30b   : > { %2125 = vmatmul.mubr.msk.f32.gmra.mrb[2].mxu1 %vm1401_vm10, %v2609_v58 }
 0x30c   : > { %v1315_v4 = vpop.xlane.xlu0 %1314 }
 0x30d   : > { %vm1403_vm12 = vcmp.eq.f32.partialorder %v3480_v8, %v1315_v4  ;;  %vm1404_vm13 = vcmp.eq.f32.partialorder %v3482_v11, %v1315_v4 }
 0x30e   : > { %2126 = vmatprep.mubr.msk.f32.mxu1 %vm1404_vm13, %v2609_v58 }
 0x30f   : > { %2127 = vmatmul.mubr.msk.f32.gmra.mrb[4].mxu1 %vm1403_vm12, %v2609_v58 }
 0x310   : > { %v1318_v38 = vpop.xlane.xlu0 %1317 }
 0x311   : > { %vm1405_vm14 = vcmp.eq.f32.partialorder %v3480_v8, %v1318_v38  ;;  %vm1406_vm15 = vcmp.eq.f32.partialorder %v3482_v11, %v1318_v38 }
 0x312   : > { %2128 = vmatprep.mubr.msk.f32.mxu1 %vm1406_vm15, %v2609_v58 }
 0x313   : > { %2129 = vmatmul.mubr.msk.f32.gmra.mrb[6].mxu1 %vm1405_vm14, %v2609_v58 }
 0x314   : > { %v1321_v40 = vpop.xlane.xlu0 %1320 }
 0x315   : > { %vm1407_vm0 = vcmp.eq.f32.partialorder %v3480_v8, %v1321_v40  ;;  %vm1408_vm1 = vcmp.eq.f32.partialorder %v3482_v11, %v1321_v40 }
 0x316   : > { %2130 = vmatprep.mubr.msk.f32.mxu1 %vm1408_vm1, %v2609_v58 }
 0x317   : > { %2131 = vmatmul.mubr.msk.f32.gmra.mrb[8].mxu1 %vm1407_vm0, %v2609_v58 }
 0x318   : > { %v1324_v15 = vpop.xlane.xlu1 %1323  ;;  %v1158_v10 = vpop.xlane.xlu0 %1157 }
 0x319   : > { %vm1409_vm2 = vcmp.eq.f32.partialorder %v3480_v8, %v1324_v15  ;;  %vm1410_vm3 = vcmp.eq.f32.partialorder %v3482_v11, %v1324_v15  ;;  %vm1227_vm4 = vcmp.eq.f32.partialorder %v3518_v6, %v1158_v10  ;;  %vm1228_vm5 = vcmp.eq.f32.partialorder %v3520_v55, %v1158_v10 }
 0x31a   : > { %2132 = vmatprep.mubr.msk.f32.mxu1 %vm1410_vm3, %v2609_v58  ;;  %v1291_v60 = vsel %vm1227_vm4, %v3480_v8, 256.0  ;;  %v1292_v62 = vsel %vm1228_vm5, %v3482_v11, 256.0 }
 0x31b   : > { %2133 = vmatmul.mubr.msk.f32.gmra.mrb[10].mxu1 %vm1409_vm2, %v2609_v58  ;;  %v1385_v43 = vmin.f32 %v1291_v60, %v1292_v62 }
 0x31c   : > { %v1074_v3 = vpop.xlane.xlu1 %1073  ;;  %v1327_v12 = vpop.xlane.xlu0 %1326 }
 0x31d   : > { %vm1171_vm6 = vcmp.eq.f32.partialorder %v3533_v61, %v1074_v3  ;;  %vm1172_vm7 = vcmp.eq.f32.partialorder %v3538_v23, %v1074_v3  ;;  %vm1411_vm8 = vcmp.eq.f32.partialorder %v3480_v8, %v1327_v12  ;;  %vm1412_vm9 = vcmp.eq.f32.partialorder %v3482_v11, %v1327_v12  ;;  %1386 = vmin.xlane.f32.xlu1 %v1385_v43 }
 0x31e   : > { %2134 = vmatprep.mubr.msk.f32.mxu1 %vm1412_vm9, %v2609_v58  ;;  %v1235_v6 = vsel %vm1171_vm6, %v3480_v8, 256.0  ;;  %v1236_v55 = vsel %vm1172_vm7, %v3482_v11, 256.0 }
 0x31f   : > { %2135 = vmatmul.mubr.msk.f32.gmra.mrb[12].mxu1 %vm1411_vm8, %v2609_v58  ;;  %v1301_v27 = vmin.f32 %v1235_v6, %v1236_v55 }
 0x320   : > { %v1330_v28 = vpop.xlane.xlu1 %1329  ;;  %v1077_v25 = vpop.xlane.xlu0 %1076 }
 0x321   : > { %vm1413_vm10 = vcmp.eq.f32.partialorder %v3480_v8, %v1330_v28  ;;  %vm1414_vm11 = vcmp.eq.f32.partialorder %v3482_v11, %v1330_v28  ;;  %vm1173_vm12 = vcmp.eq.f32.partialorder %v3548_v31, %v1077_v25  ;;  %vm1174_vm13 = vcmp.eq.f32.partialorder %v3550_v17, %v1077_v25  ;;  %1302 = vmin.xlane.f32.xlu0 %v1301_v27 }
 0x322   : > { %2136 = vmatprep.mubr.msk.f32.mxu1 %vm1414_vm11, %v2609_v58  ;;  %v1237_v61 = vsel %vm1173_vm12, %v3480_v8, 256.0  ;;  %v1238_v23 = vsel %vm1174_vm13, %v3482_v11, 256.0 }
 0x323   : > { %2137 = vmatmul.mubr.msk.f32.gmra.mrb[14].mxu1 %vm1413_vm10, %v2609_v58  ;;  %v1304_v0 = vmin.f32 %v1237_v61, %v1238_v23 }
 0x324   : > { %v1161_v52 = vpop.xlane.xlu1 %1160  ;;  %v1333_v33 = vpop.xlane.xlu0 %1332 }
 0x325   : > { %vm1229_vm14 = vcmp.eq.f32.partialorder %v3556_v59, %v1161_v52  ;;  %vm1230_vm15 = vcmp.eq.f32.partialorder %v3558_v56, %v1161_v52  ;;  %vm1415_vm0 = vcmp.eq.f32.partialorder %v3480_v8, %v1333_v33  ;;  %vm1416_vm1 = vcmp.eq.f32.partialorder %v3482_v11, %v1333_v33  ;;  %1305 = vmin.xlane.f32.xlu0 %v1304_v0 }
 0x326   : > { %2138 = vmatprep.mubr.msk.f32.mxu1 %vm1416_vm1, %v2609_v58  ;;  %v1293_v31 = vsel %vm1229_vm14, %v3480_v8, 256.0  ;;  %v1294_v17 = vsel %vm1230_vm15, %v3482_v11, 256.0 }
 0x327   : > { %2139 = vmatmul.mubr.msk.f32.gmra.mrb[16].mxu1 %vm1415_vm0, %v2609_v58  ;;  %v1388_v13 = vmin.f32 %v1293_v31, %v1294_v17 }
 0x328   : > { %v1336_v7 = vpop.xlane.xlu1 %1335 }
 0x329   : > { %vm1417_vm2 = vcmp.eq.f32.partialorder %v3480_v8, %v1336_v7  ;;  %vm1418_vm3 = vcmp.eq.f32.partialorder %v3482_v11, %v1336_v7  ;;  %1389 = vmin.xlane.f32.xlu1 %v1388_v13 }
 0x32a   : > { %2140 = vmatprep.mubr.msk.f32.mxu1 %vm1418_vm3, %v2609_v58 }
 0x32b   : > { %2141 = vmatmul.mubr.msk.f32.gmra.mrb[18].mxu1 %vm1417_vm2, %v2609_v58 }
 0x32c   : > { %v1339_v59 = vpop.xlane.xlu0 %1338 }
 0x32d   : > { %vm1419_vm4 = vcmp.eq.f32.partialorder %v3480_v8, %v1339_v59  ;;  %vm1420_vm5 = vcmp.eq.f32.partialorder %v3482_v11, %v1339_v59 }
 0x32e   : > { %2142 = vmatprep.mubr.msk.f32.mxu1 %vm1420_vm5, %v2609_v58 }
 0x32f   : > { %2143 = vmatmul.mubr.msk.f32.gmra.mrb[20].mxu1 %vm1419_vm4, %v2609_v58 }
 0x330   : > { %v1342_v56 = vpop.xlane.xlu1 %1341 }
 0x331   : > { %vm1421_vm6 = vcmp.eq.f32.partialorder %v3480_v8, %v1342_v56  ;;  %vm1422_vm7 = vcmp.eq.f32.partialorder %v3482_v11, %v1342_v56 }
 0x332   : > { %2144 = vmatprep.mubr.msk.f32.mxu1 %vm1422_vm7, %v2609_v58 }
 0x333   : > { %2145 = vmatmul.mubr.msk.f32.gmra.mrb[22].mxu1 %vm1421_vm6, %v2609_v58 }
 0x334   : > { %v1345_v46 = vpop.xlane.xlu0 %1344 }
 0x335   : > { %vm1423_vm8 = vcmp.eq.f32.partialorder %v3480_v8, %v1345_v46  ;;  %vm1424_vm9 = vcmp.eq.f32.partialorder %v3482_v11, %v1345_v46 }
 0x336   : > { %2146 = vmatprep.mubr.msk.f32.mxu1 %vm1424_vm9, %v2609_v58 }
 0x337   : > { %2147 = vmatmul.mubr.msk.f32.gmra.mrb[24].mxu1 %vm1423_vm8, %v2609_v58 }
 0x338   : > { %v1348_v19 = vpop.xlane.xlu1 %1347 }
 0x339   : > { %vm1425_vm10 = vcmp.eq.f32.partialorder %v3480_v8, %v1348_v19  ;;  %vm1426_vm11 = vcmp.eq.f32.partialorder %v3482_v11, %v1348_v19 }
 0x33a   : > { %2148 = vmatprep.mubr.msk.f32.mxu1 %vm1426_vm11, %v2609_v58 }
 0x33b   : > { %2149 = vmatmul.mubr.msk.f32.gmra.mrb[26].mxu1 %vm1425_vm10, %v2609_v58 }
 0x33c   : > { %v1351_v54 = vpop.xlane.xlu0 %1350 }
 0x33d   : > { %vm1427_vm12 = vcmp.eq.f32.partialorder %v3480_v8, %v1351_v54  ;;  %vm1428_vm13 = vcmp.eq.f32.partialorder %v3482_v11, %v1351_v54 }
 0x33e   : > { %2150 = vmatprep.mubr.msk.f32.mxu1 %vm1428_vm13, %v2609_v58 }
 0x33f   : > { %2151 = vmatmul.mubr.msk.f32.gmra.mrb[28].mxu1 %vm1427_vm12, %v2609_v58 }
 0x340   : > { %v1354_v26 = vpop.xlane.xlu1 %1353 }
 0x341   : > { %vm1429_vm14 = vcmp.eq.f32.partialorder %v3480_v8, %v1354_v26  ;;  %vm1430_vm15 = vcmp.eq.f32.partialorder %v3482_v11, %v1354_v26 }
 0x342   : > { %2152 = vmatprep.mubr.msk.f32.mxu1 %vm1430_vm15, %v2609_v58 }
 0x343   : > { %2153 = vmatmul.mubr.msk.f32.gmra.mrb[30].mxu1 %vm1429_vm14, %v2609_v58 }
 0x344   : > { %v1357_v36 = vpop.xlane.xlu0 %1356 }
 0x345   : > { %vm1431_vm0 = vcmp.eq.f32.partialorder %v3480_v8, %v1357_v36  ;;  %vm1432_vm1 = vcmp.eq.f32.partialorder %v3482_v11, %v1357_v36 }
 0x346   : > { %2154 = vmatprep.mubr.msk.f32.mxu1 %vm1432_vm1, %v2609_v58 }
 0x347   : > { %2155 = vmatmul.mubr.msk.f32.gmra.mrb[32].mxu1 %vm1431_vm0, %v2609_v58 }
 0x348   : > { %v1360_v37 = vpop.xlane.xlu1 %1359 }
 0x349   : > { %vm1433_vm2 = vcmp.eq.f32.partialorder %v3480_v8, %v1360_v37  ;;  %vm1434_vm3 = vcmp.eq.f32.partialorder %v3482_v11, %v1360_v37 }
 0x34a   : > { %2156 = vmatprep.mubr.msk.f32.mxu1 %vm1434_vm3, %v2609_v58 }
 0x34b   : > { %2157 = vmatmul.mubr.msk.f32.gmra.mrb[34].mxu1 %vm1433_vm2, %v2609_v58 }
 0x34c   : > { %v1363_v32 = vpop.xlane.xlu0 %1362 }
 0x34d   : > { %vm1435_vm4 = vcmp.eq.f32.partialorder %v3480_v8, %v1363_v32  ;;  %vm1436_vm5 = vcmp.eq.f32.partialorder %v3482_v11, %v1363_v32 }
 0x34e   : > { %2158 = vmatprep.mubr.msk.f32.mxu1 %vm1436_vm5, %v2609_v58 }
 0x34f   : > { %2159 = vmatmul.mubr.msk.f32.gmra.mrb[36].mxu1 %vm1435_vm4, %v2609_v58 }
 0x350   : > { %v1366_v5 = vpop.xlane.xlu1 %1365 }
 0x351   : > { %vm1437_vm6 = vcmp.eq.f32.partialorder %v3480_v8, %v1366_v5  ;;  %vm1438_vm7 = vcmp.eq.f32.partialorder %v3482_v11, %v1366_v5 }
 0x352   : > { %2160 = vmatprep.mubr.msk.f32.mxu1 %vm1438_vm7, %v2609_v58 }
 0x353   : > { %2161 = vmatmul.mubr.msk.f32.gmra.mrb[38].mxu1 %vm1437_vm6, %v2609_v58 }
 0x354   : > { %v1369_v35 = vpop.xlane.xlu0 %1368 }
 0x355   : > { %vm1439_vm8 = vcmp.eq.f32.partialorder %v3480_v8, %v1369_v35  ;;  %vm1440_vm9 = vcmp.eq.f32.partialorder %v3482_v11, %v1369_v35 }
 0x356   : > { %2162 = vmatprep.mubr.msk.f32.mxu1 %vm1440_vm9, %v2609_v58 }
 0x357   : > { %2163 = vmatmul.mubr.msk.f32.gmra.mrb[40].mxu1 %vm1439_vm8, %v2609_v58 }
 0x358   : > { %v1372_v57 = vpop.xlane.xlu1 %1371 }
 0x359   : > { %vm1441_vm10 = vcmp.eq.f32.partialorder %v3480_v8, %v1372_v57  ;;  %vm1442_vm11 = vcmp.eq.f32.partialorder %v3482_v11, %v1372_v57 }
 0x35a   : > { %2164 = vmatprep.mubr.msk.f32.mxu1 %vm1442_vm11, %v2609_v58 }
 0x35b   : > { %2165 = vmatmul.mubr.msk.f32.gmra.mrb[42].mxu1 %vm1441_vm10, %v2609_v58 }
 0x35c   : > { %v1375_v44 = vpop.xlane.xlu0 %1374 }
 0x35d   : > { %vm1443_vm12 = vcmp.eq.f32.partialorder %v3480_v8, %v1375_v44  ;;  %vm1444_vm13 = vcmp.eq.f32.partialorder %v3482_v11, %v1375_v44 }
 0x35e   : > { %2166 = vmatprep.mubr.msk.f32.mxu1 %vm1444_vm13, %v2609_v58 }
 0x35f   : > { %2167 = vmatmul.mubr.msk.f32.gmra.mrb[44].mxu1 %vm1443_vm12, %v2609_v58 }
 0x360   : > { %v1378_v48 = vpop.xlane.xlu1 %1377  ;;  %v1297_v51 = vpop.xlane.xlu0 %1296 }
 0x361   : > { %vm1445_vm14 = vcmp.eq.f32.partialorder %v3480_v8, %v1378_v48  ;;  %vm1446_vm15 = vcmp.eq.f32.partialorder %v3482_v11, %v1378_v48  ;;  %vm1391_vm0 = vcmp.eq.f32.partialorder %v3480_v8, %v1297_v51  ;;  %vm1392_vm1 = vcmp.eq.f32.partialorder %v3482_v11, %v1297_v51 }
 0x362   : > { %2114 = vmatprep.mubr.msk.f32.mxu0 %vm1392_vm1, %v2609_v58  ;;  %2168 = vmatprep.mubr.msk.f32.mxu1 %vm1446_vm15, %v2609_v58 }
 0x363   : > { %2115 = vmatmul.mubr.msk.f32.vlgmr.msra.gmra.mrb[64].mxu0 %vm1391_vm0, %v2609_v58  ;;  %2169 = vmatmul.mubr.msk.f32.gmra.mrb[46].mxu1 %vm1445_vm14, %v2609_v58 }
 0x364   : > { %v1381_v21 = vpop.xlane.xlu1 %1380  ;;  %v1300_v49 = vpop.xlane.xlu0 %1299 }
 0x365   : > { %vm1447_vm2 = vcmp.eq.f32.partialorder %v3480_v8, %v1381_v21  ;;  %vm1448_vm3 = vcmp.eq.f32.partialorder %v3482_v11, %v1381_v21  ;;  %vm1393_vm4 = vcmp.eq.f32.partialorder %v3480_v8, %v1300_v49  ;;  %vm1394_vm5 = vcmp.eq.f32.partialorder %v3482_v11, %v1300_v49 }
 0x366   : > { %2116 = vmatprep.mubr.msk.f32.mxu0 %vm1394_vm5, %v2609_v58  ;;  %2170 = vmatprep.mubr.msk.f32.mxu1 %vm1448_vm3, %v2609_v58 }
 0x367   : > { %2117 = vmatmul.mubr.msk.f32.gmra.mrb[66].mxu0 %vm1393_vm4, %v2609_v58  ;;  %2171 = vmatmul.mubr.msk.f32.gmra.mrb[48].mxu1 %vm1447_vm2, %v2609_v58 }
 0x368   : > { %v1384_v2 = vpop.xlane.xlu1 %1383 }
 0x369   : > { %vm1449_vm6 = vcmp.eq.f32.partialorder %v3480_v8, %v1384_v2  ;;  %vm1450_vm7 = vcmp.eq.f32.partialorder %v3482_v11, %v1384_v2 }
 0x36a   : > { %2172 = vmatprep.mubr.msk.f32.mxu1 %vm1450_vm7, %v2609_v58 }
 0x36b   : > { %2173 = vmatmul.mubr.msk.f32.gmra.mrb[50].mxu1 %vm1449_vm6, %v2609_v58 }
 0x3aa   : > { %v1387_v63 = vpop.xlane.xlu1 %1386 }
 0x3ab   : > { %vm1451_vm8 = vcmp.eq.f32.partialorder %v3480_v8, %v1387_v63  ;;  %vm1452_vm9 = vcmp.eq.f32.partialorder %v3482_v11, %v1387_v63 }
 0x3ac   : > { %2174 = vmatprep.mubr.msk.f32.mxu1 %vm1452_vm9, %v2609_v58 }
 0x3ad   : > { %2175 = vmatmul.mubr.msk.f32.gmra.mrb[52].mxu1 %vm1451_vm8, %v2609_v58 }
 0x3ae   : > { %v1303_v41 = vpop.xlane.xlu0 %1302 }
 0x3af   : > { %vm1395_vm10 = vcmp.eq.f32.partialorder %v3480_v8, %v1303_v41  ;;  %vm1396_vm11 = vcmp.eq.f32.partialorder %v3482_v11, %v1303_v41 }
 0x3b0   : > { %2118 = vmatprep.mubr.msk.f32.mxu0 %vm1396_vm11, %v2609_v58 }
 0x3b1   : > { %2119 = vmatmul.mubr.msk.f32.gmra.mrb[68].mxu0 %vm1395_vm10, %v2609_v58 }
 0x3b2   : > { %v1306_v16 = vpop.xlane.xlu0 %1305 }
 0x3b3   : > { %vm1397_vm12 = vcmp.eq.f32.partialorder %v3480_v8, %v1306_v16  ;;  %vm1398_vm13 = vcmp.eq.f32.partialorder %v3482_v11, %v1306_v16 }
 0x3b4   : > { %2120 = vmatprep.mubr.msk.f32.mxu0 %vm1398_vm13, %v2609_v58 }
 0x3b5   : > { %2121 = vmatmul.mubr.msk.f32.gmra.mrb[70].mxu0 %vm1397_vm12, %v2609_v58 }
 0x3b6   : > { %v1390_v18 = vpop.xlane.xlu1 %1389 }
 0x3b7   : > { %vm1453_vm14 = vcmp.eq.f32.partialorder %v3480_v8, %v1390_v18  ;;  %vm1454_vm15 = vcmp.eq.f32.partialorder %v3482_v11, %v1390_v18 }
 0x3b8   : > { %2176 = vmatprep.mubr.msk.f32.mxu1 %vm1454_vm15, %v2609_v58 }
 0x3b9   : > { %2177 = vmatmul.mubr.msk.f32.gmra.mrb[54].mxu1 %vm1453_vm14, %v2609_v58 }
 0x3da   : > { %v1701_v22 = vpop.f32.mrb[0].mxu1 }
 0x3db   : > { %1844 = vst [vmem:[%s3796_s6 + $0x20] sm:$0xff] %v1701_v22  ;;  %v1703_v1 = vpop.f32.mrb[1].mxu1 }
 0x3de   : > { %v1706_v14 = vpop.f32.mrb[2].mxu1 }
 0x3df   : > { %1845 = vst [vmem:[%s3796_s6 + $0x28] sm:$0xff] %v1706_v14  ;;  %v1708_v8 = vpop.f32.mrb[3].mxu1 }
 0x3e2   : > { %v1711_v11 = vpop.f32.mrb[4].mxu1 }
 0x3e3   : > { %1846 = vst [vmem:[%s3796_s6 + $0x30] sm:$0xff] %v1711_v11  ;;  %v1713_v30 = vpop.f32.mrb[5].mxu1 }
 0x3e6   : > { %v1716_v9 = vpop.f32.mrb[6].mxu1 }
 0x3e7   : > { %1847 = vst [vmem:[%s3796_s6 + $0x38] sm:$0xff] %v1716_v9  ;;  %v1718_v24 = vpop.f32.mrb[7].mxu1 }
 0x3ea   : > { %v1721_v53 = vpop.f32.mrb[8].mxu1 }
 0x3eb   : > { %1848 = vst [vmem:[%s3796_s6 + $0x40] sm:$0xff] %v1721_v53  ;;  %v1723_v42 = vpop.f32.mrb[9].mxu1 }
 0x3ee   : > { %v1726_v47 = vpop.f32.mrb[10].mxu1 }
 0x3ef   : > { %1849 = vst [vmem:[%s3796_s6 + $0x48] sm:$0xff] %v1726_v47  ;;  %v1728_v29 = vpop.f32.mrb[11].mxu1 }
 0x3f2   : > { %v1731_v50 = vpop.f32.mrb[12].mxu1 }
 0x3f3   : > { %1850 = vst [vmem:[%s3796_s6 + $0x50] sm:$0xff] %v1731_v50  ;;  %v1733_v39 = vpop.f32.mrb[13].mxu1 }
 0x3f6   : > { %v1736_v20 = vpop.f32.mrb[14].mxu1 }
 0x3f7   : > { %1851 = vst [vmem:[%s3796_s6 + $0x58] sm:$0xff] %v1736_v20  ;;  %v1738_v34 = vpop.f32.mrb[15].mxu1 }
 0x3fa   : > { %v1741_v58 = vpop.f32.mrb[16].mxu1 }
 0x3fb   : > { %1852 = vst [vmem:[%s3796_s6 + $0x60] sm:$0xff] %v1741_v58  ;;  %v1743_v45 = vpop.f32.mrb[17].mxu1 }
 0x3fe   : > { %v1746_v4 = vpop.f32.mrb[18].mxu1 }
 0x3ff   : > { %1853 = vst [vmem:[%s3796_s6 + $0x68] sm:$0xff] %v1746_v4  ;;  %v1748_v38 = vpop.f32.mrb[19].mxu1 }
 0x402   : > { %v1751_v40 = vpop.f32.mrb[20].mxu1 }
 0x403   : > { %1854 = vst [vmem:[%s3796_s6 + $0x70] sm:$0xff] %v1751_v40  ;;  %v1753_v15 = vpop.f32.mrb[21].mxu1 }
 0x406   : > { %v1756_v10 = vpop.f32.mrb[22].mxu1 }
 0x407   : > { %1855 = vst [vmem:[%s3796_s6 + $0x78] sm:$0xff] %v1756_v10  ;;  %v1758_v60 = vpop.f32.mrb[23].mxu1 }
 0x40a   : > { %v1761_v62 = vpop.f32.mrb[24].mxu1 }
 0x40b   : > { %1856 = vst [vmem:[%s3796_s6 + $0x80] sm:$0xff] %v1761_v62  ;;  %v1763_v43 = vpop.f32.mrb[25].mxu1 }
 0x40e   : > { %v1766_v3 = vpop.f32.mrb[26].mxu1 }
 0x40f   : > { %1857 = vst [vmem:[%s3796_s6 + $0x88] sm:$0xff] %v1766_v3  ;;  %v1768_v12 = vpop.f32.mrb[27].mxu1 }
 0x410   : > { %2512 = shalt.err (!%p2509_p9)
}
 0x411   : > { %s2513_s26 = scalar_lea.hbm %s3816_s28, 8192  ;;  %s2517_s14 = scalar_lea.hbm %s3918_s4, 16384 }
 0x412   : > { %p2514_p1 = scmp.ne.s32.totalorder %s3816_s28, %s2513_s26  ;;  %p2518_p11 = scmp.lt.u32.totalorder %s3816_s28, %s3918_s4 }
 0x413   : > { %p2519_p2 = scmp.lt.u32.totalorder %s2517_s14, %s2513_s26  ;;  %p2521_p6 = scmp.lt.u32.totalorder %s2513_s26, %s3816_s28 }
 0x414   : > { %p2515_p0 = pnand %p2514_p1, %p2740_p12 }
 0x415   : > { %p2520_p4 = por %p2519_p2, %p2518_p11 }
 0x416   : > { %p2516_p5 = pneg %p2515_p0 }
 0x417   : > { %p2522_p8 = por %p2521_p6, %p2520_p4 }
 0x419   : > { %p2523_p10 = pnand %p2522_p8, %p2516_p5 }
 0x41b   : > { %2526 = shalt.err (!%p2523_p10)
}
 0x41c   : > { %s2611_s29 = smov 256   ;;  %s2612_s10 = smov 16   ;;  %v1771_v6 = vpop.f32.mrb[28].mxu1 }
 0x41d   : > { %2310 = dma.vmem_to_hbm [thread:$0]  (%p2740_p12), %s3818_s15, 8192, %s3816_s28, %s1873_s27, %s2611_s29, %s2611_s29, %s2612_s10   ;;  %v1773_v55 = vpop.f32.mrb[29].mxu1 }
 0x41e   : > { %1858 = vst [vmem:[%s3796_s6 + $0x90] sm:$0xff] %v1771_v6  ;;  %v1776_v27 = vpop.f32.mrb[30].mxu1  ;;  %s2191_s15 = sshll.u32 %s2667_s22, 12  ;;  %s1908_s28 = sshll.u32 %s3796_s6, 4  ;;  %s3869_s28 = int_to_ptr.vmem [resolvable:$true] %s1908_s28 }
 0x41f   : > { %1859 = vst [vmem:[%s3796_s6 + $0x98] sm:$0xff] %v1776_v27  ;;  %v1778_v28 = vpop.f32.mrb[31].mxu1  ;;  %s3867_s12 = scalar_lea.hbm %s3919_s5, %s2191_s15  ;;  %s1878_s24 = scalar_lea.sflag [#allocation9], %s2791_s23 }
 0x420   : > { %v1781_v25 = vpop.f32.mrb[32].mxu1  ;;  %s2527_s26 = scalar_lea.vmem %s3869_s28, 4096  ;;  %s2613_s22 = smov [#allocation8]  }
 0x421   : > { %1860 = vst [vmem:[%s3796_s6 + $0xa0] sm:$0xff] %v1781_v25  ;;  %v1783_v61 = vpop.f32.mrb[33].mxu1  ;;  %p2528_p13 = scmp.ne.s32.totalorder %s3869_s28, %s2527_s26  ;;  %s2531_s16 = sshll.u32 %s2613_s22, 4  ;;  %s2532_s16 = int_to_ptr.vmem [resolvable:$false] %s2531_s16 }
 0x422   : > { %v1786_v23 = vpop.f32.mrb[34].mxu1  ;;  %s2533_s17 = scalar_lea.vmem %s2532_s16, 8192  ;;  %p2534_p9 = scmp.lt.s32.totalorder %s3869_s28, %s2532_s16 }
 0x423   : > { %1861 = vst [vmem:[%s3796_s6 + $0xa8] sm:$0xff] %v1786_v23  ;;  %v1788_v0 = vpop.f32.mrb[35].mxu1  ;;  %p2529_p3 = pnand %p2528_p13, %p2740_p12  ;;  %p2535_p1 = scmp.lt.s32.totalorder %s2533_s17, %s2527_s26 }
 0x424   : > { %v1791_v52 = vpop.f32.mrb[36].mxu1 }
 0x425   : > { %1862 = vst [vmem:[%s3796_s6 + $0xb0] sm:$0xff] %v1791_v52  ;;  %v1793_v33 = vpop.f32.mrb[37].mxu1  ;;  %p2530_p7 = pneg %p2529_p3  ;;  %p2536_p0 = por %p2535_p1, %p2534_p9 }
 0x426   : > { %v1796_v31 = vpop.f32.mrb[38].mxu1 }
 0x427   : > { %1863 = vst [vmem:[%s3796_s6 + $0xb8] sm:$0xff] %v1796_v31  ;;  %v1798_v17 = vpop.f32.mrb[39].mxu1  ;;  %p2537_p5 = pnand %p2536_p0, %p2530_p7 }
 0x42a   : > { %v1801_v13 = vpop.f32.mrb[40].mxu1 }
 0x42b   : > { %1864 = vst [vmem:[%s3796_s6 + $0xc0] sm:$0xff] %v1801_v13  ;;  %v1803_v7 = vpop.f32.mrb[41].mxu1 }
 0x42e   : > { %v1806_v59 = vpop.f32.mrb[42].mxu1 }
 0x42f   : > { %1865 = vst [vmem:[%s3796_s6 + $0xc8] sm:$0xff] %v1806_v59  ;;  %v1808_v56 = vpop.f32.mrb[43].mxu1 }
 0x432   : > { %v1811_v46 = vpop.f32.mrb[44].mxu1 }
 0x433   : > { %1866 = vst [vmem:[%s3796_s6 + $0xd0] sm:$0xff] %v1811_v46  ;;  %v1813_v19 = vpop.f32.mrb[45].mxu1 }
 0x436   : > { %v1681_v54 = vpop.f32.mrb[64].mxu0  ;;  %v1816_v26 = vpop.f32.mrb[46].mxu1 }
 0x437   : > { %1840 = vst [vmem:[%s3796_s6] sm:$0xff] %v1681_v54  ;;  %1867 = vst [vmem:[%s3796_s6 + $0xd8] sm:$0xff] %v1816_v26  ;;  %v1683_v36 = vpop.f32.mrb[65].mxu0  ;;  %v1818_v37 = vpop.f32.mrb[47].mxu1 }
 0x43a   : > { %v1686_v32 = vpop.f32.mrb[66].mxu0  ;;  %v1821_v5 = vpop.f32.mrb[48].mxu1 }
 0x43b   : > { %1841 = vst [vmem:[%s3796_s6 + $0x8] sm:$0xff] %v1686_v32  ;;  %1868 = vst [vmem:[%s3796_s6 + $0xe0] sm:$0xff] %v1821_v5  ;;  %v1688_v35 = vpop.f32.mrb[67].mxu0  ;;  %v1823_v57 = vpop.f32.mrb[49].mxu1 }
 0x43e   : > { %v1826_v44 = vpop.f32.mrb[50].mxu1 }
 0x43f   : > { %1869 = vst [vmem:[%s3796_s6 + $0xe8] sm:$0xff] %v1826_v44  ;;  %v1828_v48 = vpop.f32.mrb[51].mxu1 }
 0x480   : > { %v1831_v51 = vpop.f32.mrb[52].mxu1 }
 0x481   : > { %1870 = vst [vmem:[%s3796_s6 + $0xf0] sm:$0xff] %v1831_v51  ;;  %v1833_v21 = vpop.f32.mrb[53].mxu1 }
 0x484   : > { %v1691_v49 = vpop.f32.mrb[68].mxu0 }
 0x485   : > { %1842 = vst [vmem:[%s3796_s6 + $0x10] sm:$0xff] %v1691_v49  ;;  %v1693_v2 = vpop.f32.mrb[69].mxu0 }
 0x488   : > { %v1696_v63 = vpop.f32.mrb[70].mxu0 }
 0x489   : > { %1843 = vst [vmem:[%s3796_s6 + $0x18] sm:$0xff] %v1696_v63  ;;  %v1698_v41 = vpop.f32.mrb[71].mxu0 }
 0x48c   : > { %v1836_v16 = vpop.f32.mrb[54].mxu1 }
 0x48d   : > { %1871 = vst [vmem:[%s3796_s6 + $0xf8] sm:$0xff] %v1836_v16  ;;  %v1838_v18 = vpop.f32.mrb[55].mxu1 }
 0x48e   : > { %2540 = shalt.err (!%p2537_p5)
}
 0x48f   : > { %s2541_s6 = scalar_lea.hbm %s3867_s12, 4096  ;;  %s2545_s13 = scalar_lea.hbm %s3919_s5, 8192 }
 0x490   : > { %p2542_p11 = scmp.ne.s32.totalorder %s3867_s12, %s2541_s6  ;;  %p2546_p6 = scmp.lt.u32.totalorder %s3867_s12, %s3919_s5 }
 0x491   : > { %p2547_p8 = scmp.lt.u32.totalorder %s2545_s13, %s2541_s6  ;;  %p2549_p13 = scmp.lt.u32.totalorder %s2541_s6, %s3867_s12 }
 0x492   : > { %p2543_p2 = pnand %p2542_p11, %p2740_p12 }
 0x493   : > { %p2548_p10 = por %p2547_p8, %p2546_p6 }
 0x494   : > { %p2544_p4 = pneg %p2543_p2 }
 0x495   : > { %p2550_p3 = por %p2549_p13, %p2548_p10 }
 0x497   : > { %p2551_p7 = pnand %p2550_p3, %p2544_p4 }
 0x499   : > { %2554 = shalt.err (!%p2551_p7)
}
 0x49a   : > { %s2614_s15 = smov 128   ;;  %s2615_s27 = smov 8  }
 0x49b   : > { %2311 = dma.vmem_to_hbm [thread:$0]  (%p2740_p12), %s3869_s28, 4096, %s3867_s12, %s1878_s24, %s2614_s15, %s2614_s15, %s2615_s27  }
 0x49c PF: > { %s1923_s7 = sand.u32 1, %s2589_s18   ;;  %p3970_p9 = scmp.ne.s32.totalorder %s3936_s25, 0 }
 0x49d   : > { %p3971_p1 = scmp.ge.s32.totalorder %s2601_s21, 2  ;;  %s1924_s26 = scalar_lea.sflag [#allocation4], %s1923_s7 }
 0x49f   : > { %p2323_p0 = pnand %p3971_p1, %p3970_p9 }
 0x4a1   : > { %2580 = dma.done.wait (!%p2323_p0), %s1924_s26, 8192  }
 0x4a2   : > { %2582 = vsyncadd (!%p2323_p0), %s1924_s26, 4294959104  ;;  %s1933_s22 = scalar_lea.sflag [#allocation9], %s1923_s7 }
 0x4a3   : > { %2584 = dma.done.wait (!%p2323_p0), %s1933_s22, 4096  }
 0x4a4   : > { %2586 = vsyncadd (!%p2323_p0), %s1933_s22, 4294963200  ;;  %p23_p12 = scmp.ge.s32.totalorder %s2702_s30, 4   ;;  %s3972_s18 = smov %s2593_s19 }
 0x4a5   : > { %s3973_s19 = smov %s2597_s20  ;;  %s3974_s20 = smov %s2736_s8 }
 0x4a6   : > { %s3975_s21 = smov %s2702_s30  ;;  %25 = sbr.rel (!%p23_p12) target bundleno = 8 (0x8), region = 105 }
 0x4ad   :  { %1938 = vsyncpa [#allocation3], 1 }
 0x4ae   :  { %1940 = vsyncpa [#allocation3 + $0x1], 1 }
 0x4af   :  { %1941 = vsyncpa [#allocation6], 1 }
 0x4b0   :  { %1942 = vsyncpa [#allocation4], 1 }
 0x4b1   :  { %1944 = vsyncpa [#allocation4 + $0x1], 1 }
 0x4b2   :  { %1945 = vsyncpa [#allocation9], 1 }
 0x4b3   :  { %1947 = vsyncpa [#allocation9 + $0x1], 1 }

</bundles_post_ra>
